<compile_context>
chip_gen: v5e
topology: v5e:2x2
jax: 0.10.0
libtpu: 0.0.40
codegen_flags: <defaults>
</compile_context>

<pallas_src>
import numpy as np
import jax
import jax.numpy as jnp
from jax import lax
from jax.experimental import pallas as pl
from jax.experimental.pallas import tpu as pltpu


_VMEM = pl.BlockSpec(memory_space=pltpu.MemorySpace.VMEM)


# ----------------------------------------------------------------------------
# One bidirectional LSTM layer (PyTorch gate order i, f, g, o), optionally with
# the pooling head fused in (last layer).
#
# Inputs (all VMEM-resident; shapes are small):
#   x_ref     : (L, N, E)    input sequence (recurrence over axis 0)
#   wih_ref   : (E, 8H)      [W_ih_f^T | W_ih_b^T], bf16 MXU operand
#   whh_f_ref : (4H, 4H)     W_hh_f^T zero-padded on rows [H:]
#   whh_b_ref : (4H, 4H)     W_hh_b^T zero-padded on rows [H:]
#   b_ref     : (1, 8H)      [b_ih_f+b_hh_f | b_ih_b+b_hh_b]
# Output:
#   is_last=False : out_ref (L, N, 2H)   bidirectional hidden states
#   is_last=True  : out_ref (L, 2H)      tanh(max_N(tanh(h))) pooled features
# Scratch:
#   xproj_sc  : (L, N, 8H)   hoisted input projection (+bias)
#   hf_sc     : (L, N, 4H)   fwd hidden states (valid lanes [0, H))
#   hb_sc     : (L, N, 4H)   bwd hidden states (valid lanes [0, H))
# ----------------------------------------------------------------------------
def make_bilstm_layer_kernel(L, N, E, H, is_last):
    G = 4 * H  # per-direction gate width (i | f | g | o)

    def kernel(x_ref, wih_ref, whh_f_ref, whh_b_ref, b_ref, out_ref,
               xproj_sc, hf_sc, hb_sc):
        # ---- Hoisted input projection: one big MXU matmul for BOTH directions
        # (bf16 operands, f32 accumulate), bias folded in.
        x2d = x_ref[...].reshape(L * N, E).astype(jnp.bfloat16)
        proj = jnp.dot(x2d, wih_ref[...], preferred_element_type=jnp.float32)
        xproj_sc[...] = (proj + b_ref[...]).reshape(L, N, 2 * G)

        whh_f = whh_f_ref[...]          # (G, G); rows [H:] are zero
        whh_b = whh_b_ref[...]

        # Lane mask: tanh on the g-gate block, sigmoid elsewhere.
        lane = lax.broadcasted_iota(jnp.int32, (N, G), 1)
        g_mask = (lane >= 2 * H) & (lane < 3 * H)

        def cell(xp, h, c, whh):
            # h, c: (N, G); only lanes [0, H) are meaningful.  The bounded
            # garbage lanes are killed by the zero rows of the padded W_hh.
            gates = xp + jnp.dot(h, whh, preferred_element_type=jnp.float32)
            act = jnp.where(g_mask, jnp.tanh(gates), jax.nn.sigmoid(gates))
            f_a = pltpu.roll(act, 3 * H, axis=1)   # f block -> lanes [0, H)
            g_a = pltpu.roll(act, 2 * H, axis=1)   # g block -> lanes [0, H)
            o_a = pltpu.roll(act, 1 * H, axis=1)   # o block -> lanes [0, H)
            c_new = f_a * c + act * g_a            # i already sits at [0, H)
            h_new = o_a * jnp.tanh(c_new)
            return h_new, c_new

        zeros = jnp.zeros((N, G), jnp.float32)

        # ---- Fused fwd/bwd recurrence: two independent chains per iteration.
        def step(t, carry):
            hf, cf, hb, cb = carry
            rt = L - 1 - t
            xp_f = xproj_sc[t][:, 0:G]
            xp_b = xproj_sc[rt][:, G:2 * G]
            hf, cf = cell(xp_f, hf, cf, whh_f)
            hb, cb = cell(xp_b, hb, cb, whh_b)
            hf_sc[t] = hf
            hb_sc[rt] = hb
            return hf, cf, hb, cb

        lax.fori_loop(0, L, step, (zeros, zeros, zeros, zeros), unroll=True)

        hf_all = hf_sc[...]   # (L, N, G); valid hidden in lanes [0, H)
        hb_all = hb_sc[...]
        if is_last:
            # Fused head: tanh -> max over the pooled axis (N) -> tanh.
            pf = jnp.tanh(jnp.max(jnp.tanh(hf_all), axis=1))   # (L, G)
            pb = jnp.tanh(jnp.max(jnp.tanh(hb_all), axis=1))
            out_ref[:, 0:H] = pf[:, 0:H]
            out_ref[:, H:2 * H] = pb[:, 0:H]
        else:
            # Single concatenated (L, N, 2H) output; no wrapper concat.
            out_ref[:, :, 0:H] = hf_all[:, :, 0:H]
            out_ref[:, :, H:2 * H] = hb_all[:, :, 0:H]

    return kernel


def bilstm_layer(x, p, *, is_last):
    """One bidirectional LSTM layer.  x: (L, N, E) -> (L, N, 2H) or, for the
    last layer (head fused in), (L, 2H) pooled features."""
    L, N, E = x.shape
    G = p["whh_f_pad"].shape[0]
    H = G // 4
    if is_last:
        out_shape = jax.ShapeDtypeStruct((L, 2 * H), jnp.float32)
    else:
        out_shape = jax.ShapeDtypeStruct((L, N, 2 * H), jnp.float32)
    # Everything is VMEM-resident (no grid) at these shapes; an N-tiled
    # "parallel" grid would be the lever for 2-TC v7x / larger T.
    return pl.pallas_call(
        make_bilstm_layer_kernel(L, N, E, H, is_last),
        out_shape=out_shape,
        in_specs=[_VMEM] * 5,
        out_specs=_VMEM,
        scratch_shapes=[
            pltpu.VMEM((L, N, 2 * G), jnp.float32),  # hoisted input projection
            pltpu.VMEM((L, N, G), jnp.float32),      # fwd hidden states
            pltpu.VMEM((L, N, G), jnp.float32),      # bwd hidden states
        ],
    )(x, p["wih_cat"], p["whh_f_pad"], p["whh_b_pad"], p["b_cat"])


def bilstm_features(bert_hidden, params):
    """Stacked BiLSTM + fused pooling head -> (L, 2H) pooled features."""
    x = bert_hidden
    n_layers = len(params["lstm_layers"])
    for idx, lp in enumerate(params["lstm_layers"]):
        x = bilstm_layer(x, lp, is_last=(idx == n_layers - 1))
    return x


def bilstm_forward(bert_hidden, params):
    """Full forward after BERT: BiLSTM stack -> pooled head -> logits (L, C)."""
    pooled = bilstm_features(bert_hidden, params)
    # C=2 is far below one 128-lane vreg; keep this tiny matmul in the wrapper
    # so the kernel output stays lane-dense (per perf review).
    return jnp.dot(pooled, params["label_w_t"]) + params["label_b"]


# ----------------------------------------------------------------------------
# Parameter init (mirrors nn.LSTM / nn.Linear defaults), pre-transformed into
# the kernel layout.
# ----------------------------------------------------------------------------
def init_params(key, embedding_dim, hidden_dim, num_layers, output_dim):
    H = hidden_dim

    def uniform(k, shape, bound):
        return jax.random.uniform(k, shape, jnp.float32, -bound, bound)

    layers = []
    in_size = embedding_dim
    bound = 1.0 / np.sqrt(H)
    for _ in range(num_layers):
        key, *ks = jax.random.split(key, 9)
        wih_f = uniform(ks[0], (4 * H, in_size), bound)
        whh_f = uniform(ks[1], (4 * H, H), bound)
        b_f = uniform(ks[2], (4 * H,), bound) + uniform(ks[3], (4 * H,), bound)
        wih_b = uniform(ks[4], (4 * H, in_size), bound)
        whh_b = uniform(ks[5], (4 * H, H), bound)
        b_b = uniform(ks[6], (4 * H,), bound) + uniform(ks[7], (4 * H,), bound)
        layers.append(dict(
            # (E, 8H) = [W_ih_f^T | W_ih_b^T], bf16 MXU operand.
            wih_cat=jnp.concatenate([wih_f.T, wih_b.T], axis=1)
                       .astype(jnp.bfloat16),
            # (4H, 4H) = W_hh^T zero-padded on rows [H:].
            whh_f_pad=jnp.pad(whh_f.T, ((0, 3 * H), (0, 0))),
            whh_b_pad=jnp.pad(whh_b.T, ((0, 3 * H), (0, 0))),
            # (1, 8H) = [b_ih_f + b_hh_f | b_ih_b + b_hh_b].
            b_cat=jnp.concatenate([b_f, b_b])[None, :],
        ))
        in_size = 2 * H

    key, k1, k2 = jax.random.split(key, 3)
    lb = 1.0 / np.sqrt(2 * H)
    label_w = uniform(k1, (output_dim, 2 * H), lb)
    label_b = uniform(k2, (output_dim,), lb)
    return dict(lstm_layers=layers,
                label_w_t=label_w.T,
                label_b=label_b[None, :])


# ----------------------------------------------------------------------------
# Pure-JAX reference (PyTorch-faithful), mirroring the kernel's bf16 input-
# projection operands so a tight tolerance can be used.
# ----------------------------------------------------------------------------
def reference_forward(bert_hidden, params):
    x = bert_hidden
    for lp in params["lstm_layers"]:
        G = lp["whh_f_pad"].shape[0]
        H = G // 4
        wih = lp["wih_cat"].astype(jnp.float32)      # (E, 8H)
        whh_f = lp["whh_f_pad"][:H]                  # (H, 4H)
        whh_b = lp["whh_b_pad"][:H]
        b = lp["b_cat"]                              # (1, 8H)
        L, N, _ = x.shape
        xb = x.astype(jnp.bfloat16).astype(jnp.float32)
        proj = jnp.einsum("lne,eg->lng", xb, wih) + b  # (L, N, 8H)

        def run(dproj, whh, reverse):
            h = jnp.zeros((N, H), jnp.float32)
            c = jnp.zeros((N, H), jnp.float32)
            hs = [None] * L
            order = range(L - 1, -1, -1) if reverse else range(L)
            for t in order:
                gates = dproj[t] + h @ whh
                i = jax.nn.sigmoid(gates[:, 0 * H:1 * H])
                f = jax.nn.sigmoid(gates[:, 1 * H:2 * H])
                g = jnp.tanh(gates[:, 2 * H:3 * H])
                o = jax.nn.sigmoid(gates[:, 3 * H:4 * H])
                c = f * c + i * g
                h = o * jnp.tanh(c)
                hs[t] = h
            return jnp.stack(hs)                     # (L, N, H)

        hf = run(proj[..., :G], whh_f, reverse=False)
        hb = run(proj[..., G:], whh_b, reverse=True)
        x = jnp.concatenate([hf, hb], axis=-1)       # (L, N, 2H)

    pooled = jnp.tanh(jnp.max(jnp.tanh(x), axis=1))  # (L, 2H)
    logits = pooled @ params["label_w_t"] + params["label_b"]
    return pooled, logits


if __name__ == "__main__":
    # Small shapes consistent with the module:
    B = 2            # batch  (= LSTM "seq_len" because batch_first=False)
    T = 8            # seq    (= LSTM "batch")
    E = 768          # BERT hidden size (fixed by nn.LSTM(768, ...))
    HIDDEN = 32
    NUM_LAYERS = 1
    OUTPUT_DIM = 2   # 2-class

    key = jax.random.PRNGKey(0)
    key, kx, kp = jax.random.split(key, 3)

    # Synthetic stand-in for bert(x)[0]  (last_hidden_state).
    bert_hidden = jax.random.normal(kx, (B, T, E), jnp.float32)
    params = init_params(kp, E, HIDDEN, NUM_LAYERS, OUTPUT_DIM)

    pooled = jax.jit(bilstm_features)(bert_hidden, params)
    logits = jax.jit(bilstm_forward)(bert_hidden, params)
    jax.block_until_ready((pooled, logits))

    assert logits.shape == (B, OUTPUT_DIM), logits.shape
    assert bool(jnp.all(jnp.isfinite(logits)))

    # Tolerance check against the pure-JAX reference (matched bf16 projection
    # operands; remaining diff is MXU precision / accumulation order).
    ref_pooled, ref_logits = reference_forward(bert_hidden, params)
    pool_err = float(jnp.max(jnp.abs(pooled - ref_pooled)))
    logit_err = float(jnp.max(jnp.abs(logits - ref_logits)))
    assert pool_err < 3e-2 and logit_err < 3e-2, (pool_err, logit_err)

    print("KERNEL_OK")
</pallas_src>

<mosaic_0001>
module attributes {stable_mosaic.version = 11 : i64} {
  func.func @kernel(%arg0: memref<2x8x768xf32, #tpu.memory_space<vmem>>, %arg1: memref<768x256xbf16, #tpu.memory_space<vmem>>, %arg2: memref<128x128xf32, #tpu.memory_space<vmem>>, %arg3: memref<128x128xf32, #tpu.memory_space<vmem>>, %arg4: memref<1x256xf32, #tpu.memory_space<vmem>>, %arg5: memref<2x64xf32, #tpu.memory_space<vmem>>, %arg6: memref<2x8x256xf32, #tpu.memory_space<vmem>>, %arg7: memref<2x8x128xf32, #tpu.memory_space<vmem>>, %arg8: memref<2x8x128xf32, #tpu.memory_space<vmem>>) attributes {dimension_semantics = [], scalar_prefetch = 0 : i64, scratch_operands = 3 : i64, tpu.core_type = #tpu.core_type<tc>} {
    %c0 = arith.constant 0 : index
    %c0_0 = arith.constant 0 : index
    %c0_1 = arith.constant 0 : index
    %0 = vector.load %arg0[%c0, %c0_0, %c0_1] : memref<2x8x768xf32, #tpu.memory_space<vmem>>, vector<2x8x768xf32>
    %1 = vector.shape_cast %0 : vector<2x8x768xf32> to vector<16x768xf32>
    %2 = arith.truncf %1 : vector<16x768xf32> to vector<16x768xbf16>
    %c0_2 = arith.constant 0 : index
    %c0_3 = arith.constant 0 : index
    %3 = vector.load %arg1[%c0_2, %c0_3] : memref<768x256xbf16, #tpu.memory_space<vmem>>, vector<768x256xbf16>
    %cst = arith.constant dense<0.000000e+00> : vector<16x256xf32>
    %4 = tpu.matmul %2, %3, %cst {dimension_numbers = #tpu.dot_dimension_numbers<[1], [0], [0], [1], [0, 0, 1, 1], [], []>} : vector<16x768xbf16>, vector<768x256xbf16>, vector<16x256xf32> -> vector<16x256xf32>
    %c0_4 = arith.constant 0 : index
    %c0_5 = arith.constant 0 : index
    %5 = vector.load %arg4[%c0_4, %c0_5] : memref<1x256xf32, #tpu.memory_space<vmem>>, vector<1x256xf32>
    %6 = vector.broadcast %5 : vector<1x256xf32> to vector<16x256xf32>
    %7 = arith.addf %4, %6 : vector<16x256xf32>
    %8 = vector.shape_cast %7 : vector<16x256xf32> to vector<2x8x256xf32>
    %c0_6 = arith.constant 0 : index
    %c0_7 = arith.constant 0 : index
    %c0_8 = arith.constant 0 : index
    %9 = vector.load %arg6[%c0_6, %c0_7, %c0_8] : memref<2x8x256xf32, #tpu.memory_space<vmem>>, vector<2x8x256xf32>
    tpu.vector_store %arg6[%c0_6, %c0_7, %c0_8], %8 {strides = array<i32>} : memref<2x8x256xf32, #tpu.memory_space<vmem>>, vector<2x8x256xf32>,
    %c0_9 = arith.constant 0 : index
    %c0_10 = arith.constant 0 : index
    %10 = vector.load %arg2[%c0_9, %c0_10] : memref<128x128xf32, #tpu.memory_space<vmem>>, vector<128x128xf32>
    %c0_11 = arith.constant 0 : index
    %c0_12 = arith.constant 0 : index
    %11 = vector.load %arg3[%c0_11, %c0_12] : memref<128x128xf32, #tpu.memory_space<vmem>>, vector<128x128xf32>
    %12 = tpu.iota {dimensions = array<i32: 1>} : vector<8x128xi32>
    %c64_i32 = arith.constant 64 : i32
    %13 = vector.broadcast %c64_i32 : i32 to vector<8x128xi32>
    %14 = arith.cmpi sge, %12, %13 : vector<8x128xi32>
    %c96_i32 = arith.constant 96 : i32
    %15 = vector.broadcast %c96_i32 : i32 to vector<8x128xi32>
    %16 = arith.cmpi slt, %12, %15 : vector<8x128xi32>
    %17 = arith.andi %14, %16 : vector<8x128xi1>
    %cst_13 = arith.constant 0.000000e+00 : f32
    %18 = vector.broadcast %cst_13 : f32 to vector<8x128xf32>
    %c0_i32 = arith.constant 0 : i32
    %c1_i32 = arith.constant 1 : i32
    %19 = arith.subi %c1_i32, %c0_i32 : i32
    %20 = arith.index_cast %c0_i32 : i32 to index
    %c0_14 = arith.constant 0 : index
    %c0_15 = arith.constant 0 : index
    %21 = vector.load %arg6[%20, %c0_14, %c0_15] : memref<2x8x256xf32, #tpu.memory_space<vmem>>, vector<1x8x256xf32>
    %22 = vector.shape_cast %21 : vector<1x8x256xf32> to vector<8x256xf32>
    %23 = vector.extract_strided_slice %22 {offsets = [0, 0], sizes = [8, 128], strides = [1, 1]} : vector<8x256xf32> to vector<8x128xf32>
    %24 = arith.index_cast %19 : i32 to index
    %c0_16 = arith.constant 0 : index
    %c0_17 = arith.constant 0 : index
    %25 = vector.load %arg6[%24, %c0_16, %c0_17] : memref<2x8x256xf32, #tpu.memory_space<vmem>>, vector<1x8x256xf32>
    %26 = vector.shape_cast %25 : vector<1x8x256xf32> to vector<8x256xf32>
    %27 = vector.extract_strided_slice %26 {offsets = [0, 128], sizes = [8, 128], strides = [1, 1]} : vector<8x256xf32> to vector<8x128xf32>
    %cst_18 = arith.constant dense<0.000000e+00> : vector<8x128xf32>
    %28 = tpu.matmul %18, %10, %cst_18 {dimension_numbers = #tpu.dot_dimension_numbers<[1], [0], [0], [1], [0, 0, 1, 1], [], []>} : vector<8x128xf32>, vector<128x128xf32>, vector<8x128xf32> -> vector<8x128xf32>
    %29 = arith.addf %23, %28 : vector<8x128xf32>
    %30 = math.tanh %29 : vector<8x128xf32>
    %31 = arith.negf %29 : vector<8x128xf32>
    %32 = math.exp %31 : vector<8x128xf32>
    %cst_19 = arith.constant 1.000000e+00 : f32
    %33 = vector.broadcast %cst_19 : f32 to vector<8x128xf32>
    %34 = arith.addf %33, %32 : vector<8x128xf32>
    %35 = arith.divf %33, %34 : vector<8x128xf32>
    %36 = arith.select %17, %30, %35 : vector<8x128xi1>, vector<8x128xf32>
    %c96_i32_20 = arith.constant 96 : i32
    %37 = tpu.dynamic_rotate %36 by %c96_i32_20 dim 1 : vector<8x128xf32>, i32 -> vector<8x128xf32>
    %c64_i32_21 = arith.constant 64 : i32
    %38 = tpu.dynamic_rotate %36 by %c64_i32_21 dim 1 : vector<8x128xf32>, i32 -> vector<8x128xf32>
    %c32_i32 = arith.constant 32 : i32
    %39 = tpu.dynamic_rotate %36 by %c32_i32 dim 1 : vector<8x128xf32>, i32 -> vector<8x128xf32>
    %40 = arith.mulf %37, %18 : vector<8x128xf32>
    %41 = arith.mulf %36, %38 : vector<8x128xf32>
    %42 = arith.addf %40, %41 : vector<8x128xf32>
    %43 = math.tanh %42 : vector<8x128xf32>
    %44 = arith.mulf %39, %43 : vector<8x128xf32>
    %cst_22 = arith.constant dense<0.000000e+00> : vector<8x128xf32>
    %45 = tpu.matmul %18, %11, %cst_22 {dimension_numbers = #tpu.dot_dimension_numbers<[1], [0], [0], [1], [0, 0, 1, 1], [], []>} : vector<8x128xf32>, vector<128x128xf32>, vector<8x128xf32> -> vector<8x128xf32>
    %46 = arith.addf %27, %45 : vector<8x128xf32>
    %47 = math.tanh %46 : vector<8x128xf32>
    %48 = arith.negf %46 : vector<8x128xf32>
    %49 = math.exp %48 : vector<8x128xf32>
    %cst_23 = arith.constant 1.000000e+00 : f32
    %50 = vector.broadcast %cst_23 : f32 to vector<8x128xf32>
    %51 = arith.addf %50, %49 : vector<8x128xf32>
    %52 = arith.divf %50, %51 : vector<8x128xf32>
    %53 = arith.select %17, %47, %52 : vector<8x128xi1>, vector<8x128xf32>
    %c96_i32_24 = arith.constant 96 : i32
    %54 = tpu.dynamic_rotate %53 by %c96_i32_24 dim 1 : vector<8x128xf32>, i32 -> vector<8x128xf32>
    %c64_i32_25 = arith.constant 64 : i32
    %55 = tpu.dynamic_rotate %53 by %c64_i32_25 dim 1 : vector<8x128xf32>, i32 -> vector<8x128xf32>
    %c32_i32_26 = arith.constant 32 : i32
    %56 = tpu.dynamic_rotate %53 by %c32_i32_26 dim 1 : vector<8x128xf32>, i32 -> vector<8x128xf32>
    %57 = arith.mulf %54, %18 : vector<8x128xf32>
    %58 = arith.mulf %53, %55 : vector<8x128xf32>
    %59 = arith.addf %57, %58 : vector<8x128xf32>
    %60 = math.tanh %59 : vector<8x128xf32>
    %61 = arith.mulf %56, %60 : vector<8x128xf32>
    %62 = arith.index_cast %c0_i32 : i32 to index
    %c0_27 = arith.constant 0 : index
    %c0_28 = arith.constant 0 : index
    %63 = vector.load %arg7[%62, %c0_27, %c0_28] : memref<2x8x128xf32, #tpu.memory_space<vmem>>, vector<1x8x128xf32>
    %64 = vector.shape_cast %63 : vector<1x8x128xf32> to vector<8x128xf32>
    %65 = vector.shape_cast %44 : vector<8x128xf32> to vector<1x8x128xf32>
    tpu.vector_store %arg7[%62, %c0_27, %c0_28], %65 {strides = array<i32>} : memref<2x8x128xf32, #tpu.memory_space<vmem>>, vector<1x8x128xf32>,
    %66 = arith.index_cast %19 : i32 to index
    %c0_29 = arith.constant 0 : index
    %c0_30 = arith.constant 0 : index
    %67 = vector.load %arg8[%66, %c0_29, %c0_30] : memref<2x8x128xf32, #tpu.memory_space<vmem>>, vector<1x8x128xf32>
    %68 = vector.shape_cast %67 : vector<1x8x128xf32> to vector<8x128xf32>
    %69 = vector.shape_cast %61 : vector<8x128xf32> to vector<1x8x128xf32>
    tpu.vector_store %arg8[%66, %c0_29, %c0_30], %69 {strides = array<i32>} : memref<2x8x128xf32, #tpu.memory_space<vmem>>, vector<1x8x128xf32>,
    %c1_i32_31 = arith.constant 1 : i32
    %c1_i32_32 = arith.constant 1 : i32
    %70 = arith.subi %c1_i32_32, %c1_i32_31 : i32
    %71 = arith.index_cast %c1_i32_31 : i32 to index
    %c0_33 = arith.constant 0 : index
    %c0_34 = arith.constant 0 : index
    %72 = vector.load %arg6[%71, %c0_33, %c0_34] : memref<2x8x256xf32, #tpu.memory_space<vmem>>, vector<1x8x256xf32>
    %73 = vector.shape_cast %72 : vector<1x8x256xf32> to vector<8x256xf32>
    %74 = vector.extract_strided_slice %73 {offsets = [0, 0], sizes = [8, 128], strides = [1, 1]} : vector<8x256xf32> to vector<8x128xf32>
    %75 = arith.index_cast %70 : i32 to index
    %c0_35 = arith.constant 0 : index
    %c0_36 = arith.constant 0 : index
    %76 = vector.load %arg6[%75, %c0_35, %c0_36] : memref<2x8x256xf32, #tpu.memory_space<vmem>>, vector<1x8x256xf32>
    %77 = vector.shape_cast %76 : vector<1x8x256xf32> to vector<8x256xf32>
    %78 = vector.extract_strided_slice %77 {offsets = [0, 128], sizes = [8, 128], strides = [1, 1]} : vector<8x256xf32> to vector<8x128xf32>
    %cst_37 = arith.constant dense<0.000000e+00> : vector<8x128xf32>
    %79 = tpu.matmul %44, %10, %cst_37 {dimension_numbers = #tpu.dot_dimension_numbers<[1], [0], [0], [1], [0, 0, 1, 1], [], []>} : vector<8x128xf32>, vector<128x128xf32>, vector<8x128xf32> -> vector<8x128xf32>
    %80 = arith.addf %74, %79 : vector<8x128xf32>
    %81 = math.tanh %80 : vector<8x128xf32>
    %82 = arith.negf %80 : vector<8x128xf32>
    %83 = math.exp %82 : vector<8x128xf32>
    %cst_38 = arith.constant 1.000000e+00 : f32
    %84 = vector.broadcast %cst_38 : f32 to vector<8x128xf32>
    %85 = arith.addf %84, %83 : vector<8x128xf32>
    %86 = arith.divf %84, %85 : vector<8x128xf32>
    %87 = arith.select %17, %81, %86 : vector<8x128xi1>, vector<8x128xf32>
    %c96_i32_39 = arith.constant 96 : i32
    %88 = tpu.dynamic_rotate %87 by %c96_i32_39 dim 1 : vector<8x128xf32>, i32 -> vector<8x128xf32>
    %c64_i32_40 = arith.constant 64 : i32
    %89 = tpu.dynamic_rotate %87 by %c64_i32_40 dim 1 : vector<8x128xf32>, i32 -> vector<8x128xf32>
    %c32_i32_41 = arith.constant 32 : i32
    %90 = tpu.dynamic_rotate %87 by %c32_i32_41 dim 1 : vector<8x128xf32>, i32 -> vector<8x128xf32>
    %91 = arith.mulf %88, %42 : vector<8x128xf32>
    %92 = arith.mulf %87, %89 : vector<8x128xf32>
    %93 = arith.addf %91, %92 : vector<8x128xf32>
    %94 = math.tanh %93 : vector<8x128xf32>
    %95 = arith.mulf %90, %94 : vector<8x128xf32>
    %cst_42 = arith.constant dense<0.000000e+00> : vector<8x128xf32>
    %96 = tpu.matmul %61, %11, %cst_42 {dimension_numbers = #tpu.dot_dimension_numbers<[1], [0], [0], [1], [0, 0, 1, 1], [], []>} : vector<8x128xf32>, vector<128x128xf32>, vector<8x128xf32> -> vector<8x128xf32>
    %97 = arith.addf %78, %96 : vector<8x128xf32>
    %98 = math.tanh %97 : vector<8x128xf32>
    %99 = arith.negf %97 : vector<8x128xf32>
    %100 = math.exp %99 : vector<8x128xf32>
    %cst_43 = arith.constant 1.000000e+00 : f32
    %101 = vector.broadcast %cst_43 : f32 to vector<8x128xf32>
    %102 = arith.addf %101, %100 : vector<8x128xf32>
    %103 = arith.divf %101, %102 : vector<8x128xf32>
    %104 = arith.select %17, %98, %103 : vector<8x128xi1>, vector<8x128xf32>
    %c96_i32_44 = arith.constant 96 : i32
    %105 = tpu.dynamic_rotate %104 by %c96_i32_44 dim 1 : vector<8x128xf32>, i32 -> vector<8x128xf32>
    %c64_i32_45 = arith.constant 64 : i32
    %106 = tpu.dynamic_rotate %104 by %c64_i32_45 dim 1 : vector<8x128xf32>, i32 -> vector<8x128xf32>
    %c32_i32_46 = arith.constant 32 : i32
    %107 = tpu.dynamic_rotate %104 by %c32_i32_46 dim 1 : vector<8x128xf32>, i32 -> vector<8x128xf32>
    %108 = arith.mulf %105, %59 : vector<8x128xf32>
    %109 = arith.mulf %104, %106 : vector<8x128xf32>
    %110 = arith.addf %108, %109 : vector<8x128xf32>
    %111 = math.tanh %110 : vector<8x128xf32>
    %112 = arith.mulf %107, %111 : vector<8x128xf32>
    %113 = arith.index_cast %c1_i32_31 : i32 to index
    %c0_47 = arith.constant 0 : index
    %c0_48 = arith.constant 0 : index
    %114 = vector.load %arg7[%113, %c0_47, %c0_48] : memref<2x8x128xf32, #tpu.memory_space<vmem>>, vector<1x8x128xf32>
    %115 = vector.shape_cast %114 : vector<1x8x128xf32> to vector<8x128xf32>
    %116 = vector.shape_cast %95 : vector<8x128xf32> to vector<1x8x128xf32>
    tpu.vector_store %arg7[%113, %c0_47, %c0_48], %116 {strides = array<i32>} : memref<2x8x128xf32, #tpu.memory_space<vmem>>, vector<1x8x128xf32>,
    %117 = arith.index_cast %70 : i32 to index
    %c0_49 = arith.constant 0 : index
    %c0_50 = arith.constant 0 : index
    %118 = vector.load %arg8[%117, %c0_49, %c0_50] : memref<2x8x128xf32, #tpu.memory_space<vmem>>, vector<1x8x128xf32>
    %119 = vector.shape_cast %118 : vector<1x8x128xf32> to vector<8x128xf32>
    %120 = vector.shape_cast %112 : vector<8x128xf32> to vector<1x8x128xf32>
    tpu.vector_store %arg8[%117, %c0_49, %c0_50], %120 {strides = array<i32>} : memref<2x8x128xf32, #tpu.memory_space<vmem>>, vector<1x8x128xf32>,
    %c2_i32 = arith.constant 2 : i32
    %c0_51 = arith.constant 0 : index
    %c0_52 = arith.constant 0 : index
    %c0_53 = arith.constant 0 : index
    %121 = vector.load %arg7[%c0_51, %c0_52, %c0_53] : memref<2x8x128xf32, #tpu.memory_space<vmem>>, vector<2x8x128xf32>
    %c0_54 = arith.constant 0 : index
    %c0_55 = arith.constant 0 : index
    %c0_56 = arith.constant 0 : index
    %122 = vector.load %arg8[%c0_54, %c0_55, %c0_56] : memref<2x8x128xf32, #tpu.memory_space<vmem>>, vector<2x8x128xf32>
    %123 = math.tanh %121 : vector<2x8x128xf32>
    %cst_57 = arith.constant dense<0xFF800000> : vector<2x128xf32>
    %124 = vector.multi_reduction <maximumf>, %123, %cst_57 [1] : vector<2x8x128xf32> to vector<2x128xf32>
    %125 = math.tanh %124 : vector<2x128xf32>
    %126 = math.tanh %122 : vector<2x8x128xf32>
    %cst_58 = arith.constant dense<0xFF800000> : vector<2x128xf32>
    %127 = vector.multi_reduction <maximumf>, %126, %cst_58 [1] : vector<2x8x128xf32> to vector<2x128xf32>
    %128 = math.tanh %127 : vector<2x128xf32>
    %129 = vector.extract_strided_slice %125 {offsets = [0, 0], sizes = [2, 32], strides = [1, 1]} : vector<2x128xf32> to vector<2x32xf32>
    %c0_59 = arith.constant 0 : index
    %c0_60 = arith.constant 0 : index
    %130 = vector.load %arg5[%c0_59, %c0_60] : memref<2x64xf32, #tpu.memory_space<vmem>>, vector<2x32xf32>
    tpu.vector_store %arg5[%c0_59, %c0_60], %129 {strides = array<i32>} : memref<2x64xf32, #tpu.memory_space<vmem>>, vector<2x32xf32>,
    %131 = vector.extract_strided_slice %128 {offsets = [0, 0], sizes = [2, 32], strides = [1, 1]} : vector<2x128xf32> to vector<2x32xf32>
    %c0_61 = arith.constant 0 : index
    %c32 = arith.constant 32 : index
    %132 = vector.load %arg5[%c0_61, %c32] : memref<2x64xf32, #tpu.memory_space<vmem>>, vector<2x32xf32>
    tpu.vector_store %arg5[%c0_61, %c32], %131 {strides = array<i32>} : memref<2x64xf32, #tpu.memory_space<vmem>>, vector<2x32xf32>,
    return
  }
}

</mosaic_0001>

<bundles_post_ra>
// kernel: bilstm_features.1
= control target key start
LH: loop header
LB: loop body
LE: loop exit
PB: predicated region body
PF: predicated region fallthrough
CT: control target
= control target key end

     0   :  { %10 = vsyncpa [#allocation6], 0  ;;  %s2026_s0 = inlined_call_operand.hbm [shape: f32[2,8,768], index: 0, kind: input, shape index: {}]   ;;  %s2027_s1 = inlined_call_operand.hbm [shape: bf16[768,256], index: 1, kind: input, shape index: {}]   ;;  %s2028_s2 = inlined_call_operand.hbm [shape: f32[128,128], index: 2, kind: input, shape index: {}]   ;;  %s2029_s3 = inlined_call_operand.hbm [shape: f32[128,128], index: 3, kind: input, shape index: {}]   ;;  %s2030_s4 = inlined_call_operand.hbm [shape: f32[1,256], index: 4, kind: input, shape index: {}]   ;;  %s2031_s5 = inlined_call_operand.hbm [shape: f32[2,64], index: 5, kind: output, shape index: {}]  }
   0x1   :  { %11 = vsyncpa [#allocation9], 0 }
   0x2   :  { %12 = vsyncpa [#allocation12], 0  ;;  %s31_s20 = sshll.u32 %s2027_s1, 4  ;;  %s32_s20 = int_to_ptr.hbm [resolvable:$true] %s31_s20 }
   0x3   :  { %13 = vsyncpa [#allocation7], 0  ;;  %s1897_s21 = smov [#allocation8]   ;;  %s57_s25 = sshll.u32 %s2029_s3, 4  ;;  %s58_s25 = int_to_ptr.hbm [resolvable:$true] %s57_s25 }
   0x4   :  { %s33_s22 = sshll.u32 %s1897_s21, 4  ;;  %s1898_s26 = smov 128   ;;  %s34_s22 = int_to_ptr.vmem [resolvable:$true] %s33_s22 }
   0x5   :  { %s1899_s27 = smov 8   ;;  %s1900_s28 = smov [#allocation11]  }
   0x6   :  { %39 = dma.hbm_to_vmem [thread:$0]  %s32_s20, 12288, %s34_s22, [#allocation9], %s1898_s26, %s1898_s26, %s1899_s27  }
   0x7   :  { %s59_s29 = sshll.u32 %s1900_s28, 4  ;;  %s18_s7 = sshll.u32 %s2026_s0, 4  ;;  %s60_s29 = int_to_ptr.vmem [resolvable:$true] %s59_s29  ;;  %s19_s7 = int_to_ptr.hbm [resolvable:$true] %s18_s7 }
   0x8   :  { %65 = dma.hbm_to_vmem [thread:$0]  %s58_s25, 2048, %s60_s29, [#allocation12], %s1898_s26, %s1898_s26, %s1899_s27  }
   0x9   :  { %s1901_s1 = smov [#allocation5]   ;;  %s44_s3 = sshll.u32 %s2028_s2, 4  ;;  %s45_s3 = int_to_ptr.hbm [resolvable:$true] %s44_s3 }
   0xa   :  { %s20_s8 = sshll.u32 %s1901_s1, 4  ;;  %s1902_s11 = smov 768   ;;  %s21_s8 = int_to_ptr.vmem [resolvable:$true] %s20_s8 }
   0xb   :  { %s1903_s12 = smov 48   ;;  %s1904_s13 = smov [#allocation10]  }
   0xc   :  { %26 = dma.hbm_to_vmem [thread:$0]  %s19_s7, 1536, %s21_s8, [#allocation6], %s1902_s11, %s1902_s11, %s1903_s12  }
   0xd   :  { %s46_s14 = sshll.u32 %s1904_s13, 4  ;;  %s71_s0 = sshll.u32 %s2030_s4, 4  ;;  %s47_s14 = int_to_ptr.vmem [resolvable:$true] %s46_s14  ;;  %s72_s0 = int_to_ptr.hbm [resolvable:$true] %s71_s0 }
   0xe   :  { %52 = dma.hbm_to_vmem [thread:$0]  %s45_s3, 2048, %s47_s14, [#allocation9], %s1898_s26, %s1898_s26, %s1899_s27  }
   0xf   :  { %s1905_s17 = smov [#allocation13]  }
  0x10   :  { %s73_s18 = sshll.u32 %s1905_s17, 4  ;;  %s74_s18 = int_to_ptr.vmem [resolvable:$true] %s73_s18 }
  0x11   :  { %76 = dma.hbm_to_vmem [thread:$0]  %s72_s0, 32, %s74_s18, [#allocation12]  }
  0x12   :  { %1889 = dma.done.wait [#allocation6], 1536  }
  0x13   :  { %1890 = vsyncadd [#allocation6], 4294965760 }
  0x14   :  { %1891 = dma.done.wait [#allocation9], 14336  }
  0x15   :  { %1892 = vsyncadd [#allocation9], 4294952960 }
  0x16   :  { %1893 = dma.done.wait [#allocation12], 2080  }
  0x17   :  { %1894 = vsyncadd [#allocation12], 4294965216  ;;  %v1257_v0 = vld [vmem:[#allocation8 + $0x70] sm:$0xf]  ;;  %v1602_v1 = vld [vmem:[#allocation8 + $0x74] sm:$0xf0] }
  0x18   :  { %v1321_v2 = vld [vmem:[#allocation8 + $0xf0] sm:$0xf]  ;;  %v1258_v3 = vor.u32 %v1602_v1, %v1257_v0  ;;  %v1618_v4 = vld [vmem:[#allocation8 + $0xf4] sm:$0xf0]  ;;  %v1249_v11 = vld [vmem:[#allocation8 + $0x60] sm:$0xf] }
  0x19   :  { %v1385_v5 = vld [vmem:[#allocation8 + $0x170] sm:$0xf]  ;;  %v1634_v6 = vld [vmem:[#allocation8 + $0x174] sm:$0xf0]  ;;  %v1322_v7 = vor.u32 %v1618_v4, %v1321_v2  ;;  %v1600_v13 = vld [vmem:[#allocation8 + $0x64] sm:$0xf0] }
  0x1a   :  { %v1386_v8 = vor.u32 %v1634_v6, %v1385_v5  ;;  %v1449_v9 = vld [vmem:[#allocation8 + $0x1f0] sm:$0xf]  ;;  %v1650_v10 = vld [vmem:[#allocation8 + $0x1f4] sm:$0xf0]  ;;  %697 = vmatpush.bf16.msra.mxu0 %v1258_v3  ;;  %v1313_v14 = vld [vmem:[#allocation8 + $0xe0] sm:$0xf]  ;;  %v1250_v16 = vor.u32 %v1600_v13, %v1249_v11 }
  0x1b   :  { %v1450_v12 = vor.u32 %v1650_v10, %v1449_v9  ;;  %v1616_v15 = vld [vmem:[#allocation8 + $0xe4] sm:$0xf0]  ;;  %711 = vmatpush.bf16.msra.mxu1 %v1322_v7  ;;  %v1377_v18 = vld [vmem:[#allocation8 + $0x160] sm:$0xf]  ;;  %v1241_v23 = vld [vmem:[#allocation8 + $0x50] sm:$0xf] }
  0x1c   :  { %725 = vmatpush.bf16.msra.mxu2 %v1386_v8  ;;  %v1314_v17 = vor.u32 %v1616_v15, %v1313_v14  ;;  %v1632_v19 = vld [vmem:[#allocation8 + $0x164] sm:$0xf0]  ;;  %v1441_v20 = vld [vmem:[#allocation8 + $0x1e0] sm:$0xf]  ;;  %v1598_v24 = vld [vmem:[#allocation8 + $0x54] sm:$0xf0] }
  0x1d   :  { %739 = vmatpush.bf16.msra.mxu3 %v1450_v12  ;;  %v1378_v21 = vor.u32 %v1632_v19, %v1377_v18  ;;  %v1648_v22 = vld [vmem:[#allocation8 + $0x1e4] sm:$0xf0]  ;;  %v1305_v26 = vld [vmem:[#allocation8 + $0xd0] sm:$0xf]  ;;  %v1614_v27 = vld [vmem:[#allocation8 + $0xd4] sm:$0xf0]  ;;  %v1242_v29 = vor.u32 %v1598_v24, %v1241_v23 }
  0x1e   :  { %v1442_v25 = vor.u32 %v1648_v22, %v1441_v20  ;;  %v1369_v28 = vld [vmem:[#allocation8 + $0x150] sm:$0xf]  ;;  %698 = vmatpush.bf16.msra.mxu0 %v1250_v16  ;;  %v1630_v30 = vld [vmem:[#allocation8 + $0x154] sm:$0xf0]  ;;  %v1306_v33 = vor.u32 %v1614_v27, %v1305_v26  ;;  %v1233_v35 = vld [vmem:[#allocation8 + $0x40] sm:$0xf] }
  0x1f   :  { %v1433_v31 = vld [vmem:[#allocation8 + $0x1d0] sm:$0xf]  ;;  %v1646_v32 = vld [vmem:[#allocation8 + $0x1d4] sm:$0xf0]  ;;  %712 = vmatpush.bf16.msra.mxu1 %v1314_v17  ;;  %v1370_v34 = vor.u32 %v1630_v30, %v1369_v28  ;;  %v1596_v36 = vld [vmem:[#allocation8 + $0x44] sm:$0xf0] }
  0x20   :  { %726 = vmatpush.bf16.msra.mxu2 %v1378_v21  ;;  %v1297_v37 = vld [vmem:[#allocation8 + $0xc0] sm:$0xf]  ;;  %v1434_v38 = vor.u32 %v1646_v32, %v1433_v31  ;;  %v1612_v39 = vld [vmem:[#allocation8 + $0xc4] sm:$0xf0]  ;;  %v1234_v44 = vor.u32 %v1596_v36, %v1233_v35  ;;  %v1225_v47 = vld [vmem:[#allocation8 + $0x30] sm:$0xf] }
  0x21   :  { %740 = vmatpush.bf16.msra.mxu3 %v1442_v25  ;;  %v1361_v40 = vld [vmem:[#allocation8 + $0x140] sm:$0xf]  ;;  %v1628_v41 = vld [vmem:[#allocation8 + $0x144] sm:$0xf0]  ;;  %v1298_v45 = vor.u32 %v1612_v39, %v1297_v37  ;;  %v1594_v48 = vld [vmem:[#allocation8 + $0x34] sm:$0xf0] }
  0x22   :  { %v1425_v42 = vld [vmem:[#allocation8 + $0x1c0] sm:$0xf]  ;;  %v1644_v43 = vld [vmem:[#allocation8 + $0x1c4] sm:$0xf0]  ;;  %699 = vmatpush.bf16.msra.mxu0 %v1242_v29  ;;  %v1362_v46 = vor.u32 %v1628_v41, %v1361_v40  ;;  %v1289_v49 = vld [vmem:[#allocation8 + $0xb0] sm:$0xf]  ;;  %v1226_v56 = vor.u32 %v1594_v48, %v1225_v47 }
  0x23   :  { %713 = vmatpush.bf16.msra.mxu1 %v1306_v33  ;;  %v1426_v50 = vor.u32 %v1644_v43, %v1425_v42  ;;  %v1610_v51 = vld [vmem:[#allocation8 + $0xb4] sm:$0xf0]  ;;  %v1353_v52 = vld [vmem:[#allocation8 + $0x130] sm:$0xf]  ;;  %v1217_v59 = vld [vmem:[#allocation8 + $0x20] sm:$0xf] }
  0x24   :  { %727 = vmatpush.bf16.msra.mxu2 %v1370_v34  ;;  %v1626_v53 = vld [vmem:[#allocation8 + $0x134] sm:$0xf0]  ;;  %v1417_v54 = vld [vmem:[#allocation8 + $0x1b0] sm:$0xf]  ;;  %v1290_v57 = vor.u32 %v1610_v51, %v1289_v49  ;;  %v1592_v60 = vld [vmem:[#allocation8 + $0x24] sm:$0xf0] }
  0x25   :  { %741 = vmatpush.bf16.msra.mxu3 %v1434_v38  ;;  %v1642_v55 = vld [vmem:[#allocation8 + $0x1b4] sm:$0xf0]  ;;  %v1354_v58 = vor.u32 %v1626_v53, %v1353_v52  ;;  %v1281_v61 = vld [vmem:[#allocation8 + $0xa0] sm:$0xf]  ;;  %v1608_v63 = vld [vmem:[#allocation8 + $0xa4] sm:$0xf0]  ;;  %v1218_v4 = vor.u32 %v1592_v60, %v1217_v59 }
  0x26   :  { %700 = vmatpush.bf16.msra.mxu0 %v1234_v44  ;;  %v1418_v62 = vor.u32 %v1642_v55, %v1417_v54  ;;  %v1345_v0 = vld [vmem:[#allocation8 + $0x120] sm:$0xf]  ;;  %v1624_v1 = vld [vmem:[#allocation8 + $0x124] sm:$0xf0]  ;;  %v1282_v5 = vor.u32 %v1608_v63, %v1281_v61  ;;  %v1209_v7 = vld [vmem:[#allocation8 + $0x10] sm:$0xf] }
  0x27   :  { %714 = vmatpush.bf16.msra.mxu1 %v1298_v45  ;;  %v1409_v2 = vld [vmem:[#allocation8 + $0x1a0] sm:$0xf]  ;;  %v1640_v3 = vld [vmem:[#allocation8 + $0x1a4] sm:$0xf0]  ;;  %v1346_v6 = vor.u32 %v1624_v1, %v1345_v0  ;;  %v1590_v8 = vld [vmem:[#allocation8 + $0x14] sm:$0xf0] }
  0x28   :  { %728 = vmatpush.bf16.msra.mxu2 %v1362_v46  ;;  %v1273_v9 = vld [vmem:[#allocation8 + $0x90] sm:$0xf]  ;;  %v1410_v10 = vor.u32 %v1640_v3, %v1409_v2  ;;  %v1606_v11 = vld [vmem:[#allocation8 + $0x94] sm:$0xf0]  ;;  %v1210_v16 = vor.u32 %v1590_v8, %v1209_v7  ;;  %v1201_v17 = vld [vmem:[#allocation8] sm:$0xf] }
  0x29   :  { %742 = vmatpush.bf16.msra.mxu3 %v1426_v50  ;;  %v1337_v12 = vld [vmem:[#allocation8 + $0x110] sm:$0xf]  ;;  %v1622_v13 = vld [vmem:[#allocation8 + $0x114] sm:$0xf0]  ;;  %v1588_v18 = vld [vmem:[#allocation8 + $0x4] sm:$0xf0]  ;;  %v1274_v19 = vor.u32 %v1606_v11, %v1273_v9 }
  0x2a   :  { %701 = vmatpush.bf16.msra.mxu0 %v1226_v56  ;;  %v1401_v14 = vld [vmem:[#allocation8 + $0x190] sm:$0xf]  ;;  %v1638_v15 = vld [vmem:[#allocation8 + $0x194] sm:$0xf0]  ;;  %v1338_v20 = vor.u32 %v1622_v13, %v1337_v12  ;;  %v1265_v21 = vld [vmem:[#allocation8 + $0x80] sm:$0xf]  ;;  %v1202_v31 = vor.u32 %v1588_v18, %v1201_v17 }
  0x2b   :  { %715 = vmatpush.bf16.msra.mxu1 %v1290_v57  ;;  %v1604_v22 = vld [vmem:[#allocation8 + $0x84] sm:$0xf0]  ;;  %v1329_v23 = vld [vmem:[#allocation8 + $0x100] sm:$0xf]  ;;  %v1402_v24 = vor.u32 %v1638_v15, %v1401_v14  ;;  %v1513_v26 = vld [vmem:[#allocation8 + $0x270] sm:$0xf] }
  0x2c   :  { %729 = vmatpush.bf16.msra.mxu2 %v1354_v58  ;;  %v1620_v25 = vld [vmem:[#allocation8 + $0x104] sm:$0xf0]  ;;  %v1666_v27 = vld [vmem:[#allocation8 + $0x274] sm:$0xf0]  ;;  %v1577_v28 = vld [vmem:[#allocation8 + $0x2f0] sm:$0xf]  ;;  %v1266_v35 = vor.u32 %v1604_v22, %v1265_v21 }
  0x2d   :  { %743 = vmatpush.bf16.msra.mxu3 %v1418_v62  ;;  %v1682_v29 = vld [vmem:[#allocation8 + $0x2f4] sm:$0xf0]  ;;  %v1601_v30 = vld [vmem:[#allocation8 + $0x74] sm:$0xf]  ;;  %v1259_v32 = vld [vmem:[#allocation8 + $0x78] sm:$0xf0]  ;;  %v1330_v36 = vor.u32 %v1620_v25, %v1329_v23  ;;  %v1514_v39 = vor.u32 %v1666_v27, %v1513_v26 }
  0x2e   :  { %702 = vmatpush.bf16.msra.mxu0 %v1218_v4  ;;  %v1393_v33 = vld [vmem:[#allocation8 + $0x180] sm:$0xf]  ;;  %v1636_v34 = vld [vmem:[#allocation8 + $0x184] sm:$0xf0]  ;;  %v1617_v37 = vld [vmem:[#allocation8 + $0xf4] sm:$0xf]  ;;  %v1578_v40 = vor.u32 %v1682_v29, %v1577_v28  ;;  %v1262_v43 = vor.u32 %v1601_v30, %v1259_v32 }
  0x2f   :  { %716 = vmatpush.bf16.msra.mxu1 %v1282_v5  ;;  %v1323_v38 = vld [vmem:[#allocation8 + $0xf8] sm:$0xf0]  ;;  %v1505_v41 = vld [vmem:[#allocation8 + $0x260] sm:$0xf]  ;;  %v1664_v42 = vld [vmem:[#allocation8 + $0x264] sm:$0xf0]  ;;  %v1394_v44 = vor.u32 %v1636_v34, %v1393_v33 }
  0x30   :  { %730 = vmatpush.bf16.msra.mxu2 %v1346_v6  ;;  %v1569_v45 = vld [vmem:[#allocation8 + $0x2e0] sm:$0xf]  ;;  %v1680_v46 = vld [vmem:[#allocation8 + $0x2e4] sm:$0xf0]  ;;  %v1599_v47 = vld [vmem:[#allocation8 + $0x64] sm:$0xf]  ;;  %v1326_v48 = vor.u32 %v1617_v37, %v1323_v38  ;;  %v1506_v55 = vor.u32 %v1664_v42, %v1505_v41 }
  0x31   :  { %744 = vmatpush.bf16.msra.mxu3 %v1410_v10  ;;  %v1251_v49 = vld [vmem:[#allocation8 + $0x68] sm:$0xf0]  ;;  %v1615_v50 = vld [vmem:[#allocation8 + $0xe4] sm:$0xf]  ;;  %v1497_v52 = vld [vmem:[#allocation8 + $0x250] sm:$0xf]  ;;  %v1570_v56 = vor.u32 %v1680_v46, %v1569_v45 }
  0x32   :  { %703 = vmatpush.bf16.msra.mxu0 %v1210_v16  ;;  %v1315_v51 = vld [vmem:[#allocation8 + $0xe8] sm:$0xf0]  ;;  %v97_v53 = vld [vmem:[#allocation5] sm:$0xff]  ;;  %v103_v54 = vld [vmem:[#allocation5 + $0x30] sm:$0xff]  ;;  %v1254_v61 = vor.u32 %v1599_v47, %v1251_v49  ;;  %s1907_s2 = smov 64   ;;  %s1908_s4 = smov 32  }
  0x33   :  { %717 = vmatpush.bf16.msra.mxu1 %v1274_v19  ;;  %v1662_v57 = vld [vmem:[#allocation8 + $0x254] sm:$0xf0]  ;;  %v1561_v58 = vld [vmem:[#allocation8 + $0x2d0] sm:$0xf]  ;;  %v1956_v60 = vpack.c.bf16 %v103_v54, %v97_v53  ;;  %v1597_v62 = vld [vmem:[#allocation8 + $0x54] sm:$0xf]  ;;  %v1318_v1 = vor.u32 %v1615_v50, %v1315_v51 }
  0x34   :  { %731 = vmatpush.bf16.msra.mxu2 %v1338_v20  ;;  %v1678_v59 = vld [vmem:[#allocation8 + $0x2d4] sm:$0xf0]  ;;  %v1243_v63 = vld [vmem:[#allocation8 + $0x58] sm:$0xf0]  ;;  %v98_v0 = vld [vmem:[#allocation5 + $0x8] sm:$0xff]  ;;  %v1498_v10 = vor.u32 %v1662_v57, %v1497_v52  ;;  %s1909_s19 = smov 96  }
  0x35   :  { %745 = vmatpush.bf16.msra.mxu3 %v1402_v24  ;;  %v104_v2 = vld [vmem:[#allocation5 + $0x38] sm:$0xff]  ;;  %v99_v3 = vld [vmem:[#allocation5 + $0x10] sm:$0xff]  ;;  %v105_v4 = vld [vmem:[#allocation5 + $0x40] sm:$0xff]  ;;  %v1562_v11 = vor.u32 %v1678_v59, %v1561_v58  ;;  %v1246_v14 = vor.u32 %v1597_v62, %v1243_v63  ;;  %s1910_s20 = smov [#allocation14]   ;;  %s1187_s24 = sshll.u32 %s2031_s5, 4  ;;  %s1188_s24 = int_to_ptr.hbm [resolvable:$true] %s1187_s24 }
  0x36   :  { %704 = vmatpush.bf16.msra.mxu0 %v1202_v31  ;;  %v1613_v5 = vld [vmem:[#allocation8 + $0xd4] sm:$0xf]  ;;  %v1307_v6 = vld [vmem:[#allocation8 + $0xd8] sm:$0xf0]  ;;  %v1959_v7 = vpack.c.bf16 %v104_v2, %v98_v0  ;;  %v1961_v8 = vpack.c.bf16 %v105_v4, %v99_v3  ;;  %v1489_v12 = vld [vmem:[#allocation8 + $0x240] sm:$0xf] }
  0x37   :  { %718 = vmatpush.bf16.msra.mxu1 %v1266_v35  ;;  %v100_v9 = vld [vmem:[#allocation5 + $0x18] sm:$0xff]  ;;  %v106_v13 = vld [vmem:[#allocation5 + $0x48] sm:$0xff]  ;;  %v1553_v16 = vld [vmem:[#allocation8 + $0x2c0] sm:$0xf]  ;;  %v1310_v19 = vor.u32 %v1613_v5, %v1307_v6  ;;  %s1185_s21 = sshll.u32 %s1910_s20, 4  ;;  %s1186_s21 = int_to_ptr.vmem [resolvable:$true] %s1185_s21 }
  0x38   :  { %732 = vmatpush.bf16.msra.mxu2 %v1330_v36  ;;  %v1660_v15 = vld [vmem:[#allocation8 + $0x244] sm:$0xf0]  ;;  %v1964_v18 = vpack.c.bf16 %v106_v13, %v100_v9  ;;  %v1595_v20 = vld [vmem:[#allocation8 + $0x44] sm:$0xf]  ;;  %v1235_v21 = vld [vmem:[#allocation8 + $0x48] sm:$0xf0] }
  0x39   :  { %746 = vmatpush.bf16.msra.mxu3 %v1394_v44  ;;  %705 = vmatmul.bf16.vlgmr.msra.gmra.mxu0 %v1956_v60  ;;  %v1676_v17 = vld [vmem:[#allocation8 + $0x2c4] sm:$0xf0]  ;;  %v1611_v22 = vld [vmem:[#allocation8 + $0xc4] sm:$0xf]  ;;  %v1299_v23 = vld [vmem:[#allocation8 + $0xc8] sm:$0xf0]  ;;  %v1490_v24 = vor.u32 %v1660_v15, %v1489_v12  ;;  %v1238_v27 = vor.u32 %v1595_v20, %v1235_v21 }
  0x3a   :  { %753 = vmatpush.bf16.msrb.mxu0 %v1514_v39  ;;  %719 = vmatmul.bf16.vlgmr.msra.gmra.mxu1 %v1959_v7  ;;  %v1554_v25 = vor.u32 %v1676_v17, %v1553_v16  ;;  %v1481_v26 = vld [vmem:[#allocation8 + $0x230] sm:$0xf]  ;;  %v1658_v28 = vld [vmem:[#allocation8 + $0x234] sm:$0xf0]  ;;  %v1302_v31 = vor.u32 %v1611_v22, %v1299_v23  ;;  %v1593_v32 = vld [vmem:[#allocation8 + $0x34] sm:$0xf] }
  0x3b   :  { %767 = vmatpush.bf16.msrb.mxu1 %v1578_v40  ;;  %733 = vmatmul.bf16.vlgmr.msra.gmra.mxu2 %v1961_v8  ;;  %v1545_v29 = vld [vmem:[#allocation8 + $0x2b0] sm:$0xf]  ;;  %v1674_v30 = vld [vmem:[#allocation8 + $0x2b4] sm:$0xf0]  ;;  %v1227_v33 = vld [vmem:[#allocation8 + $0x38] sm:$0xf0]  ;;  %v1482_v36 = vor.u32 %v1658_v28, %v1481_v26 }
  0x3c   :  { %781 = vmatpush.bf16.msrb.mxu2 %v1262_v43  ;;  %747 = vmatmul.bf16.vlgmr.msra.gmra.mxu3 %v1964_v18  ;;  %v1609_v34 = vld [vmem:[#allocation8 + $0xb4] sm:$0xf]  ;;  %v1291_v35 = vld [vmem:[#allocation8 + $0xb8] sm:$0xf0]  ;;  %v1546_v37 = vor.u32 %v1674_v30, %v1545_v29  ;;  %v1473_v38 = vld [vmem:[#allocation8 + $0x220] sm:$0xf]  ;;  %v1230_v39 = vor.u32 %v1593_v32, %v1227_v33 }
  0x3d   :  { %795 = vmatpush.bf16.msrb.mxu3 %v1326_v48  ;;  %v1656_v40 = vld [vmem:[#allocation8 + $0x224] sm:$0xf0]  ;;  %v1537_v41 = vld [vmem:[#allocation8 + $0x2a0] sm:$0xf]  ;;  %v1294_v43 = vor.u32 %v1609_v34, %v1291_v35  ;;  %v1591_v44 = vld [vmem:[#allocation8 + $0x24] sm:$0xf] }
  0x3e   :  { %754 = vmatpush.bf16.msrb.mxu0 %v1506_v55  ;;  %v1672_v42 = vld [vmem:[#allocation8 + $0x2a4] sm:$0xf0]  ;;  %v1219_v45 = vld [vmem:[#allocation8 + $0x28] sm:$0xf0]  ;;  %v1607_v46 = vld [vmem:[#allocation8 + $0xa4] sm:$0xf]  ;;  %v1474_v48 = vor.u32 %v1656_v40, %v1473_v38 }
  0x3f   :  { %768 = vmatpush.bf16.msrb.mxu1 %v1570_v56  ;;  %v1283_v47 = vld [vmem:[#allocation8 + $0xa8] sm:$0xf0]  ;;  %v1538_v49 = vor.u32 %v1672_v42, %v1537_v41  ;;  %v1465_v50 = vld [vmem:[#allocation8 + $0x210] sm:$0xf]  ;;  %v1222_v51 = vor.u32 %v1591_v44, %v1219_v45  ;;  %v1654_v52 = vld [vmem:[#allocation8 + $0x214] sm:$0xf0] }
  0x40   :  { %782 = vmatpush.bf16.msrb.mxu2 %v1254_v61  ;;  %v1529_v53 = vld [vmem:[#allocation8 + $0x290] sm:$0xf]  ;;  %v1670_v54 = vld [vmem:[#allocation8 + $0x294] sm:$0xf0]  ;;  %v1286_v55 = vor.u32 %v1607_v46, %v1283_v47  ;;  %v1589_v56 = vld [vmem:[#allocation8 + $0x14] sm:$0xf]  ;;  %v1466_v63 = vor.u32 %v1654_v52, %v1465_v50 }
  0x41   :  { %796 = vmatpush.bf16.msrb.mxu3 %v1318_v1  ;;  %v1211_v57 = vld [vmem:[#allocation8 + $0x18] sm:$0xf0]  ;;  %v1605_v58 = vld [vmem:[#allocation8 + $0x94] sm:$0xf]  ;;  %v1457_v61 = vld [vmem:[#allocation8 + $0x200] sm:$0xf]  ;;  %v1530_v0 = vor.u32 %v1670_v54, %v1529_v53 }
  0x42   :  { %755 = vmatpush.bf16.msrb.mxu0 %v1498_v10  ;;  %v1275_v59 = vld [vmem:[#allocation8 + $0x98] sm:$0xf0]  ;;  %v1652_v62 = vld [vmem:[#allocation8 + $0x204] sm:$0xf0]  ;;  %v1521_v1 = vld [vmem:[#allocation8 + $0x280] sm:$0xf]  ;;  %v1214_v4 = vor.u32 %v1589_v56, %v1211_v57 }
  0x43   :  { %769 = vmatpush.bf16.msrb.mxu1 %v1562_v11  ;;  %v1668_v2 = vld [vmem:[#allocation8 + $0x284] sm:$0xf0]  ;;  %v1587_v3 = vld [vmem:[#allocation8 + $0x4] sm:$0xf]  ;;  %v1203_v5 = vld [vmem:[#allocation8 + $0x8] sm:$0xf0]  ;;  %v1278_v10 = vor.u32 %v1605_v58, %v1275_v59  ;;  %v1458_v17 = vor.u32 %v1652_v62, %v1457_v61 }
  0x44   :  { %783 = vmatpush.bf16.msrb.mxu2 %v1246_v14  ;;  %v1633_v6 = vld [vmem:[#allocation8 + $0x174] sm:$0xf]  ;;  %v1387_v9 = vld [vmem:[#allocation8 + $0x178] sm:$0xf0]  ;;  %v1603_v15 = vld [vmem:[#allocation8 + $0x84] sm:$0xf]  ;;  %v1206_v23 = vor.u32 %v1587_v3, %v1203_v5 }
  0x45   :  { %797 = vmatpush.bf16.msrb.mxu3 %v1310_v19  ;;  %v1649_v11 = vld [vmem:[#allocation8 + $0x1f4] sm:$0xf]  ;;  %v1451_v12 = vld [vmem:[#allocation8 + $0x1f8] sm:$0xf0]  ;;  %v1267_v16 = vld [vmem:[#allocation8 + $0x88] sm:$0xf0]  ;;  %v1522_v19 = vor.u32 %v1668_v2, %v1521_v1 }
  0x46   :  { %756 = vmatpush.bf16.msrb.mxu0 %v1490_v24  ;;  %v1665_v13 = vld [vmem:[#allocation8 + $0x274] sm:$0xf]  ;;  %v1515_v14 = vld [vmem:[#allocation8 + $0x278] sm:$0xf0]  ;;  %v101_v20 = vld [vmem:[#allocation5 + $0x20] sm:$0xff]  ;;  %v1390_v24 = vor.u32 %v1633_v6, %v1387_v9  ;;  %v1454_v28 = vor.u32 %v1649_v11, %v1451_v12  ;;  %v1270_v33 = vor.u32 %v1603_v15, %v1267_v16 }
  0x47   :  { %770 = vmatpush.bf16.msrb.mxu1 %v1554_v25  ;;  %v107_v21 = vld [vmem:[#allocation5 + $0x50] sm:$0xff]  ;;  %v1579_v25 = vld [vmem:[#allocation8 + $0x2f8] sm:$0xf0]  ;;  %v102_v26 = vld [vmem:[#allocation5 + $0x28] sm:$0xff]  ;;  %v1518_v29 = vor.u32 %v1665_v13, %v1515_v14 }
  0x48   :  { %784 = vmatpush.bf16.msrb.mxu2 %v1238_v27  ;;  %v1681_v22 = vld [vmem:[#allocation8 + $0x2f4] sm:$0xf]  ;;  %v108_v27 = vld [vmem:[#allocation5 + $0x58] sm:$0xff]  ;;  %v1631_v30 = vld [vmem:[#allocation8 + $0x164] sm:$0xf]  ;;  %v1968_v34 = vpack.c.bf16 %v107_v21, %v101_v20 }
  0x49   :  { %798 = vmatpush.bf16.msrb.mxu3 %v1302_v31  ;;  %v1379_v31 = vld [vmem:[#allocation8 + $0x168] sm:$0xf0]  ;;  %v1647_v32 = vld [vmem:[#allocation8 + $0x1e4] sm:$0xf]  ;;  %v1582_v38 = vor.u32 %v1681_v22, %v1579_v25  ;;  %v1629_v45 = vld [vmem:[#allocation8 + $0x154] sm:$0xf] }
  0x4a   :  { %757 = vmatpush.bf16.msrb.mxu0 %v1482_v36  ;;  %v1443_v35 = vld [vmem:[#allocation8 + $0x1e8] sm:$0xf0]  ;;  %v1663_v36 = vld [vmem:[#allocation8 + $0x264] sm:$0xf]  ;;  %v1382_v40 = vor.u32 %v1631_v30, %v1379_v31  ;;  %v1371_v46 = vld [vmem:[#allocation8 + $0x158] sm:$0xf0] }
  0x4b   :  { %771 = vmatpush.bf16.msrb.mxu1 %v1546_v37  ;;  %v1507_v37 = vld [vmem:[#allocation8 + $0x268] sm:$0xf0]  ;;  %v1679_v41 = vld [vmem:[#allocation8 + $0x2e4] sm:$0xf]  ;;  %v1645_v47 = vld [vmem:[#allocation8 + $0x1d4] sm:$0xf]  ;;  %v1374_v52 = vor.u32 %v1629_v45, %v1371_v46 }
  0x4c   :  { %785 = vmatpush.bf16.msrb.mxu2 %v1230_v39  ;;  %v1970_v39 = vpack.c.bf16 %v108_v27, %v102_v26  ;;  %v1571_v42 = vld [vmem:[#allocation8 + $0x2e8] sm:$0xf0]  ;;  %v1510_v44 = vor.u32 %v1663_v36, %v1507_v37  ;;  %v1499_v50 = vld [vmem:[#allocation8 + $0x258] sm:$0xf0]  ;;  %v1677_v53 = vld [vmem:[#allocation8 + $0x2d4] sm:$0xf] }
  0x4d   :  { %799 = vmatpush.bf16.msrb.mxu3 %v1294_v43  ;;  %v1446_v43 = vor.u32 %v1647_v32, %v1443_v35  ;;  %v1563_v54 = vld [vmem:[#allocation8 + $0x2d8] sm:$0xf0]  ;;  %v1627_v57 = vld [vmem:[#allocation8 + $0x144] sm:$0xf]  ;;  %v1363_v58 = vld [vmem:[#allocation8 + $0x148] sm:$0xf0] }
  0x4e   :  { %758 = vmatpush.bf16.msrb.mxu0 %v1474_v48  ;;  %v1435_v48 = vld [vmem:[#allocation8 + $0x1d8] sm:$0xf0]  ;;  %v1643_v59 = vld [vmem:[#allocation8 + $0x1c4] sm:$0xf]  ;;  %v1427_v61 = vld [vmem:[#allocation8 + $0x1c8] sm:$0xf0]  ;;  %v1366_v1 = vor.u32 %v1627_v57, %v1363_v58 }
  0x4f   :  { %772 = vmatpush.bf16.msrb.mxu1 %v1538_v49  ;;  %v1661_v49 = vld [vmem:[#allocation8 + $0x254] sm:$0xf]  ;;  %v1659_v62 = vld [vmem:[#allocation8 + $0x244] sm:$0xf]  ;;  %v1555_v3 = vld [vmem:[#allocation8 + $0x2c8] sm:$0xf0] }
  0x50   :  { %786 = vmatpush.bf16.msrb.mxu2 %v1222_v51  ;;  %v1574_v51 = vor.u32 %v1679_v41, %v1571_v42  ;;  %v1502_v56 = vor.u32 %v1661_v49, %v1499_v50  ;;  %v1675_v2 = vld [vmem:[#allocation8 + $0x2c4] sm:$0xf]  ;;  %v1625_v5 = vld [vmem:[#allocation8 + $0x134] sm:$0xf]  ;;  %v1355_v6 = vld [vmem:[#allocation8 + $0x138] sm:$0xf0] }
  0x51   :  { %800 = vmatpush.bf16.msrb.mxu3 %v1286_v55  ;;  %v1438_v55 = vor.u32 %v1645_v47, %v1435_v48  ;;  %v1641_v9 = vld [vmem:[#allocation8 + $0x1b4] sm:$0xf]  ;;  %v1483_v12 = vld [vmem:[#allocation8 + $0x238] sm:$0xf0]  ;;  %v1558_v13 = vor.u32 %v1675_v2, %v1555_v3  ;;  %v1347_v20 = vld [vmem:[#allocation8 + $0x128] sm:$0xf0] }
  0x52   :  { %759 = vmatpush.bf16.msrb.mxu0 %v1466_v63  ;;  %v1491_v63 = vld [vmem:[#allocation8 + $0x248] sm:$0xf0]  ;;  %v1657_v11 = vld [vmem:[#allocation8 + $0x234] sm:$0xf]  ;;  %v1547_v15 = vld [vmem:[#allocation8 + $0x2b8] sm:$0xf0] }
  0x53   :  { %773 = vmatpush.bf16.msrb.mxu1 %v1530_v0  ;;  %v1566_v0 = vor.u32 %v1677_v53, %v1563_v54  ;;  %v1673_v14 = vld [vmem:[#allocation8 + $0x2b4] sm:$0xf]  ;;  %v1639_v21 = vld [vmem:[#allocation8 + $0x1a4] sm:$0xf]  ;;  %v1411_v22 = vld [vmem:[#allocation8 + $0x1a8] sm:$0xf0] }
  0x54   :  { %787 = vmatpush.bf16.msrb.mxu2 %v1214_v4  ;;  %v1494_v4 = vor.u32 %v1659_v62, %v1491_v63  ;;  %v1550_v25 = vor.u32 %v1673_v14, %v1547_v15  ;;  %v1671_v27 = vld [vmem:[#allocation8 + $0x2a4] sm:$0xf]  ;;  %v1621_v31 = vld [vmem:[#allocation8 + $0x114] sm:$0xf]  ;;  %v1339_v32 = vld [vmem:[#allocation8 + $0x118] sm:$0xf0] }
  0x55   :  { %801 = vmatpush.bf16.msrb.mxu3 %v1278_v10  ;;  %v1419_v10 = vld [vmem:[#allocation8 + $0x1b8] sm:$0xf0]  ;;  %v1653_v36 = vld [vmem:[#allocation8 + $0x214] sm:$0xf]  ;;  %v1619_v45 = vld [vmem:[#allocation8 + $0x104] sm:$0xf] }
  0x56   :  { %760 = vmatpush.bf16.msrb.mxu0 %v1458_v17  ;;  %v1422_v16 = vor.u32 %v1641_v9, %v1419_v10  ;;  %v1486_v17 = vor.u32 %v1657_v11, %v1483_v12  ;;  %v1403_v35 = vld [vmem:[#allocation8 + $0x198] sm:$0xf0]  ;;  %v1669_v41 = vld [vmem:[#allocation8 + $0x294] sm:$0xf]  ;;  %v1331_v46 = vld [vmem:[#allocation8 + $0x108] sm:$0xf0] }
  0x57   :  { %774 = vmatpush.bf16.msrb.mxu1 %v1522_v19  ;;  %v1623_v19 = vld [vmem:[#allocation8 + $0x124] sm:$0xf]  ;;  %v1467_v37 = vld [vmem:[#allocation8 + $0x218] sm:$0xf0]  ;;  %v1395_v48 = vld [vmem:[#allocation8 + $0x188] sm:$0xf0] }
  0x58   :  { %788 = vmatpush.bf16.msrb.mxu2 %v1206_v23  ;;  %v1655_v23 = vld [vmem:[#allocation8 + $0x224] sm:$0xf]  ;;  %v1350_v26 = vor.u32 %v1623_v19, %v1347_v20  ;;  %v1531_v42 = vld [vmem:[#allocation8 + $0x298] sm:$0xf0]  ;;  %v1459_v50 = vld [vmem:[#allocation8 + $0x208] sm:$0xf0] }
  0x59   :  { %802 = vmatpush.bf16.msrb.mxu3 %v1270_v33  ;;  %761 = vmatmul.bf16.vlgmr.msrb.gmra.mxu0 %v1968_v34  ;;  %v1637_v33 = vld [vmem:[#allocation8 + $0x194] sm:$0xf]  ;;  %v1635_v47 = vld [vmem:[#allocation8 + $0x184] sm:$0xf]  ;;  %v1523_v54 = vld [vmem:[#allocation8 + $0x288] sm:$0xf0] }
  0x5a   :  { %809 = vmatpush.bf16.msra.mxu0 %v1390_v24  ;;  %775 = vmatmul.bf16.vlgmr.msrb.gmra.mxu1 %v1970_v39  ;;  %v1475_v24 = vld [vmem:[#allocation8 + $0x228] sm:$0xf0]  ;;  %v1651_v49 = vld [vmem:[#allocation8 + $0x204] sm:$0xf]  ;;  %v884_v57 = vld [vmem:[#allocation10 + $0x78] sm:$0xff] }
  0x5b   :  { %823 = vmatpush.bf16.msra.mxu1 %v1454_v28  ;;  %789 = vmatmul.bf16.vlgmr.msrb.gmra.mxu2 %v1956_v60  ;;  %v1430_v60 = vor.u32 %v1643_v59, %v1427_v61  ;;  %v1539_v28 = vld [vmem:[#allocation8 + $0x2a8] sm:$0xf0]  ;;  %v1478_v30 = vor.u32 %v1655_v23, %v1475_v24  ;;  %v1667_v53 = vld [vmem:[#allocation8 + $0x284] sm:$0xf]  ;;  %v900_v58 = vld [vmem:[#allocation11 + $0x78] sm:$0xff]  ;;  %v1906_v24 = vmov 0.0  }
  0x5c   :  { %837 = vmatpush.bf16.msra.mxu2 %v1518_v29  ;;  %803 = vmatmul.bf16.vlgmr.msrb.gmra.mxu3 %v1959_v7  ;;  %v1358_v7 = vor.u32 %v1625_v5, %v1355_v6  ;;  %v1414_v29 = vor.u32 %v1639_v21, %v1411_v22  ;;  %v1526_v59 = vor.u32 %v1667_v53, %v1523_v54  ;;  %v883_v61 = vld [vmem:[#allocation10 + $0x70] sm:$0xff]  ;;  %v882_v63 = vld [vmem:[#allocation10 + $0x68] sm:$0xff]  ;;  %v897_v2 = vld [vmem:[#allocation11 + $0x60] sm:$0xff] }
  0x5d   :  { %851 = vmatpush.bf16.msra.mxu3 %v1582_v38  ;;  %v1542_v38 = vor.u32 %v1671_v27, %v1539_v28  ;;  %v899_v62 = vld [vmem:[#allocation11 + $0x70] sm:$0xff]  ;;  %v880_v3 = vld [vmem:[#allocation10 + $0x58] sm:$0xff]  ;;  %v893_v5 = vld [vmem:[#allocation11 + $0x40] sm:$0xff] }
  0x5e   :  { %810 = vmatpush.bf16.msra.mxu0 %v1382_v40  ;;  %v1342_v40 = vor.u32 %v1621_v31, %v1339_v32  ;;  %v876_v6 = vld [vmem:[#allocation10 + $0x38] sm:$0xff]  ;;  %v875_v10 = vld [vmem:[#allocation10 + $0x30] sm:$0xff]  ;;  %v874_v12 = vld [vmem:[#allocation10 + $0x28] sm:$0xff] }
  0x5f   :  { %824 = vmatpush.bf16.msra.mxu1 %v1446_v43  ;;  %v1406_v43 = vor.u32 %v1637_v33, %v1403_v35  ;;  %v892_v9 = vld [vmem:[#allocation11 + $0x38] sm:$0xff]  ;;  %v891_v11 = vld [vmem:[#allocation11 + $0x30] sm:$0xff]  ;;  %v889_v14 = vld [vmem:[#allocation11 + $0x20] sm:$0xff] }
  0x60   :  { %838 = vmatpush.bf16.msra.mxu2 %v1510_v44  ;;  %v1470_v44 = vor.u32 %v1653_v36, %v1467_v37  ;;  %v872_v15 = vld [vmem:[#allocation10 + $0x18] sm:$0xff]  ;;  %v887_v19 = vld [vmem:[#allocation11 + $0x10] sm:$0xff]  ;;  %v870_v20 = vld [vmem:[#allocation10 + $0x8] sm:$0xff] }
  0x61   :  { %852 = vmatpush.bf16.msra.mxu3 %v1574_v51  ;;  %v1534_v51 = vor.u32 %v1669_v41, %v1531_v42  ;;  %v886_v21 = vld [vmem:[#allocation11 + $0x8] sm:$0xff]  ;;  %v869_v22 = vld [vmem:[#allocation10] sm:$0xff] }
  0x62   :  { %811 = vmatpush.bf16.msra.mxu0 %v1374_v52  ;;  %v1334_v52 = vor.u32 %v1619_v45, %v1331_v46  ;;  %v885_v23 = vld [vmem:[#allocation11] sm:$0xff] }
  0x63   :  { %825 = vmatpush.bf16.msra.mxu1 %v1438_v55  ;;  %v1398_v55 = vor.u32 %v1635_v47, %v1395_v48 }
  0x64   :  { %839 = vmatpush.bf16.msra.mxu2 %v1502_v56  ;;  %v1462_v56 = vor.u32 %v1651_v49, %v1459_v50 }
  0x65   :  { %853 = vmatpush.bf16.msra.mxu3 %v1566_v0  ;;  %v898_v0 = vld [vmem:[#allocation11 + $0x68] sm:$0xff] }
  0x66   :  { %812 = vmatpush.bf16.msra.mxu0 %v1366_v1  ;;  %v881_v1 = vld [vmem:[#allocation10 + $0x60] sm:$0xff] }
  0x67   :  { %826 = vmatpush.bf16.msra.mxu1 %v1430_v60  ;;  %v896_v60 = vld [vmem:[#allocation11 + $0x58] sm:$0xff] }
  0x68   :  { %840 = vmatpush.bf16.msra.mxu2 %v1494_v4  ;;  %v878_v4 = vld [vmem:[#allocation10 + $0x48] sm:$0xff] }
  0x69   :  { %854 = vmatpush.bf16.msra.mxu3 %v1558_v13  ;;  %v890_v13 = vld [vmem:[#allocation11 + $0x28] sm:$0xff] }
  0x6a   :  { %813 = vmatpush.bf16.msra.mxu0 %v1358_v7  ;;  %v873_v7 = vld [vmem:[#allocation10 + $0x20] sm:$0xff] }
  0x6b   :  { %827 = vmatpush.bf16.msra.mxu1 %v1422_v16  ;;  %v888_v16 = vld [vmem:[#allocation11 + $0x18] sm:$0xff] }
  0x6c   :  { %841 = vmatpush.bf16.msra.mxu2 %v1486_v17  ;;  %v871_v17 = vld [vmem:[#allocation10 + $0x10] sm:$0xff] }
  0x6d   :  { %855 = vmatpush.bf16.msra.mxu3 %v1550_v25 }
  0x6e   :  { %814 = vmatpush.bf16.msra.mxu0 %v1350_v26  ;;  %v211_v26 = vld [vmem:[#allocation13] sm:$0x3] }
  0x6f   :  { %828 = vmatpush.bf16.msra.mxu1 %v1414_v29  ;;  %v213_v28 = vperm.slane %v211_v26, 0 }
  0x70   :  { %842 = vmatpush.bf16.msra.mxu2 %v1478_v30 }
  0x71   :  { %856 = vmatpush.bf16.msra.mxu3 %v1542_v38 }
  0x72   :  { %815 = vmatpush.bf16.msra.mxu0 %v1342_v40 }
  0x73   :  { %829 = vmatpush.bf16.msra.mxu1 %v1406_v43  ;;  %v214_v43 = vperm.slane %v211_v26, 1 }
  0x74   :  { %843 = vmatpush.bf16.msra.mxu2 %v1470_v44 }
  0x75   :  { %857 = vmatpush.bf16.msra.mxu3 %v1534_v51 }
  0x76   :  { %816 = vmatpush.bf16.msra.mxu0 %v1334_v52 }
  0x77   :  { %830 = vmatpush.bf16.msra.mxu1 %v1398_v55 }
  0x78   :  { %844 = vmatpush.bf16.msra.mxu2 %v1462_v56 }
  0x79   :  { %858 = vmatpush.bf16.msra.mxu3 %v1526_v59  ;;  %817 = vmatmul.bf16.vlgmr.msra.gmra.mxu0 %v1961_v8  ;;  %v879_v8 = vld [vmem:[#allocation10 + $0x50] sm:$0xff] }
  0x7a   :  { %909 = vmatpush.msrb.mxu0 %v884_v57  ;;  %831 = vmatmul.bf16.vlgmr.msra.gmra.mxu1 %v1964_v18  ;;  %v894_v18 = vld [vmem:[#allocation11 + $0x48] sm:$0xff] }
  0x7b   :  { %962 = vmatpush.msrb.mxu1 %v900_v58  ;;  %845 = vmatmul.bf16.vlgmr.msra.gmra.mxu2 %v1968_v34  ;;  %v895_v34 = vld [vmem:[#allocation11 + $0x50] sm:$0xff] }
  0x7c   :  { %910 = vmatpush.msrb.mxu0 %v883_v61  ;;  %1020 = vmatpush.msrb.mxu2 %v884_v57 }
  0x7d   :  { %963 = vmatpush.msrb.mxu1 %v899_v62  ;;  %859 = vmatmul.bf16.vlgmr.msra.gmra.mxu3 %v1970_v39  ;;  %v877_v39 = vld [vmem:[#allocation10 + $0x40] sm:$0xff] }
  0x7e   :  { %911 = vmatpush.msrb.mxu0 %v882_v63  ;;  %1073 = vmatpush.msrb.mxu3 %v900_v58 }
  0x7f   :  { %964 = vmatpush.msrb.mxu1 %v898_v0  ;;  %1021 = vmatpush.msrb.mxu2 %v883_v61 }
  0x80   :  { %912 = vmatpush.msrb.mxu0 %v881_v1  ;;  %1074 = vmatpush.msrb.mxu3 %v899_v62 }
  0x81   :  { %965 = vmatpush.msrb.mxu1 %v897_v2  ;;  %1022 = vmatpush.msrb.mxu2 %v882_v63 }
  0x82   :  { %913 = vmatpush.msrb.mxu0 %v880_v3  ;;  %1075 = vmatpush.msrb.mxu3 %v898_v0 }
  0x83   :  { %966 = vmatpush.msrb.mxu1 %v896_v60  ;;  %1023 = vmatpush.msrb.mxu2 %v881_v1 }
  0x84   :  { %914 = vmatpush.msrb.mxu0 %v879_v8  ;;  %1076 = vmatpush.msrb.mxu3 %v897_v2 }
  0x85   :  { %967 = vmatpush.msrb.mxu1 %v895_v34  ;;  %1024 = vmatpush.msrb.mxu2 %v880_v3 }
  0x86   :  { %915 = vmatpush.msrb.mxu0 %v878_v4  ;;  %1077 = vmatpush.msrb.mxu3 %v896_v60 }
  0x87   :  { %968 = vmatpush.msrb.mxu1 %v894_v18  ;;  %1025 = vmatpush.msrb.mxu2 %v879_v8 }
  0x88   :  { %916 = vmatpush.msrb.mxu0 %v877_v39  ;;  %1078 = vmatpush.msrb.mxu3 %v895_v34 }
  0x89   :  { %969 = vmatpush.msrb.mxu1 %v893_v5  ;;  %1026 = vmatpush.msrb.mxu2 %v878_v4 }
  0x8a   :  { %917 = vmatpush.msrb.mxu0 %v876_v6  ;;  %1079 = vmatpush.msrb.mxu3 %v894_v18 }
  0x8b   :  { %970 = vmatpush.msrb.mxu1 %v892_v9  ;;  %1027 = vmatpush.msrb.mxu2 %v877_v39 }
  0x8c   :  { %918 = vmatpush.msrb.mxu0 %v875_v10  ;;  %1080 = vmatpush.msrb.mxu3 %v893_v5 }
  0x8d   :  { %971 = vmatpush.msrb.mxu1 %v891_v11  ;;  %1028 = vmatpush.msrb.mxu2 %v876_v6 }
  0x8e   :  { %919 = vmatpush.msrb.mxu0 %v874_v12  ;;  %1081 = vmatpush.msrb.mxu3 %v892_v9 }
  0x8f   :  { %972 = vmatpush.msrb.mxu1 %v890_v13  ;;  %1029 = vmatpush.msrb.mxu2 %v875_v10 }
  0x90   :  { %920 = vmatpush.msrb.mxu0 %v873_v7  ;;  %1082 = vmatpush.msrb.mxu3 %v891_v11 }
  0x91   :  { %973 = vmatpush.msrb.mxu1 %v889_v14  ;;  %1030 = vmatpush.msrb.mxu2 %v874_v12 }
  0x92   :  { %921 = vmatpush.msrb.mxu0 %v872_v15  ;;  %1083 = vmatpush.msrb.mxu3 %v890_v13 }
  0x93   :  { %974 = vmatpush.msrb.mxu1 %v888_v16  ;;  %1031 = vmatpush.msrb.mxu2 %v873_v7 }
  0x94   :  { %922 = vmatpush.msrb.mxu0 %v871_v17  ;;  %1084 = vmatpush.msrb.mxu3 %v889_v14 }
  0x95   :  { %975 = vmatpush.msrb.mxu1 %v887_v19  ;;  %1032 = vmatpush.msrb.mxu2 %v872_v15 }
  0x96   :  { %923 = vmatpush.msrb.mxu0 %v870_v20  ;;  %1085 = vmatpush.msrb.mxu3 %v888_v16 }
  0x97   :  { %976 = vmatpush.msrb.mxu1 %v886_v21  ;;  %1033 = vmatpush.msrb.mxu2 %v871_v17 }
  0x98   :  { %924 = vmatpush.msrb.mxu0 %v869_v22  ;;  %1086 = vmatpush.msrb.mxu3 %v887_v19 }
  0x99   :  { %977 = vmatpush.msrb.mxu1 %v885_v23  ;;  %925 = vmatmul.f32.vlgmr.msrb.gmra.mxu0 %v1906_v24 }
  0x9a   :  { %978 = vmatmul.f32.vlgmr.msrb.gmra.mxu1 %v1906_v24  ;;  %1034 = vmatpush.msrb.mxu2 %v870_v20 }
  0x9b   :  { %1087 = vmatpush.msrb.mxu3 %v886_v21 }
  0x9c   :  { %1035 = vmatpush.msrb.mxu2 %v869_v22  ;;  %v901_v22 = vlaneseq }
  0x9d   :  { %1088 = vmatpush.msrb.mxu3 %v885_v23 }
  0x9e   :  { %v902_v23 = vand.u32 127, %v901_v22 }
  0xa0   :  { %vm903_vm0 = vcmp.ge.s32.totalorder %v902_v23, 64  ;;  %vm904_vm1 = vcmp.lt.s32.totalorder %v902_v23, 96 }
  0xa1   :  { %vm1984_vm4 = vmand %vm903_vm0, %vm904_vm1 }
  0xb6   :  { %v706_v25 = vpop.f32.mrf.mxu0 }
  0xb7   :  { %v720_v27 = vpop.f32.mrf.mxu1  ;;  %v707_v62 = vadd.f32 %v706_v25, %v213_v28 }
  0xb9   :  { %v721_v0 = vadd.f32 %v720_v27, %v707_v62 }
  0xbe   :  { %v708_v29 = vpop.f32.mrf.mxu0  ;;  %v734_v31 = vpop.f32.mrf.mxu2 }
  0xbf   :  { %v709_v30 = vadd.f32 %v708_v29, %v213_v28  ;;  %v722_v32 = vpop.f32.mrf.mxu1  ;;  %v748_v33 = vpop.f32.mrf.mxu3  ;;  %v735_v3 = vadd.f32 %v734_v31, %v721_v0 }
  0xc1   :  { %v723_v35 = vadd.f32 %v722_v32, %v709_v30  ;;  %v749_v4 = vadd.f32 %v748_v33, %v735_v3 }
  0xc6   :  { %v736_v36 = vpop.f32.mrf.mxu2 }
  0xc7   :  { %v737_v37 = vadd.f32 %v736_v36, %v723_v35  ;;  %v750_v38 = vpop.f32.mrf.mxu3 }
  0xc9   :  { %v751_v40 = vadd.f32 %v750_v38, %v737_v37 }
  0xd6   :  { %v762_v41 = vpop.f32.mrf.mxu0 }
  0xd7   :  { %v776_v42 = vpop.f32.mrf.mxu1  ;;  %v763_v5 = vadd.f32 %v762_v41, %v749_v4 }
  0xd9   :  { %v777_v10 = vadd.f32 %v776_v42, %v763_v5 }
  0xde   :  { %v764_v44 = vpop.f32.mrf.mxu0  ;;  %v790_v45 = vpop.f32.mrf.mxu2 }
  0xdf   :  { %v765_v46 = vadd.f32 %v764_v44, %v751_v40  ;;  %v778_v47 = vpop.f32.mrf.mxu1  ;;  %v791_v48 = vadd.f32 %v790_v45, %v214_v43  ;;  %v804_v49 = vpop.f32.mrf.mxu3 }
  0xe1   :  { %v1980_v50 = vadd.f32 %v778_v47, %v765_v46  ;;  %v805_v51 = vadd.f32 %v804_v49, %v791_v48 }
  0xe6   :  { %v792_v52 = vpop.f32.mrf.mxu2 }
  0xe7   :  { %v806_v53 = vpop.f32.mrf.mxu3  ;;  %v793_v1 = vadd.f32 %v792_v52, %v214_v43 }
  0xe9   :  { %v807_v60 = vadd.f32 %v806_v53, %v793_v1 }
  0xf6   :  { %v818_v54 = vpop.f32.mrf.mxu0 }
  0xf7   :  { %v819_v55 = vadd.f32 %v818_v54, %v805_v51  ;;  %v832_v56 = vpop.f32.mrf.mxu1 }
  0xf9   :  { %v833_v57 = vadd.f32 %v832_v56, %v819_v55 }
  0xfe   :  { %v846_v58 = vpop.f32.mrf.mxu2  ;;  %v820_v2 = vpop.f32.mrf.mxu0 }
  0xff   :  { %v847_v59 = vadd.f32 %v846_v58, %v833_v57  ;;  %v821_v8 = vadd.f32 %v820_v2, %v807_v60  ;;  %v834_v34 = vpop.f32.mrf.mxu1 }
 0x100   :  { %v860_v61 = vpop.f32.mrf.mxu3 }
 0x101   :  { %v1982_v63 = vadd.f32 %v860_v61, %v847_v59  ;;  %v835_v39 = vadd.f32 %v834_v34, %v821_v8 }
 0x106   :  { %v848_v18 = vpop.f32.mrf.mxu2 }
 0x107   :  { %v849_v6 = vadd.f32 %v848_v18, %v835_v39 }
 0x108   :  { %v862_v9 = vpop.f32.mrf.mxu3 }
 0x109   :  { %v863_v11 = vadd.f32 %v862_v9, %v849_v6 }
 0x116   :  { %v926_v12 = vpop.f32.mrf.mxu0 }
 0x117   :  { %v979_v13 = vpop.f32.mrf.mxu1  ;;  %v929_v7 = vadd.f32 %v926_v12, %v777_v10 }
 0x118   :  { %v982_v14 = vadd.f32 %v979_v13, %v863_v11 }
 0x119   :  { %v1583_v15 = vmul.f32 -1.442695, %v929_v7 }
 0x11a   :  { %v1584_v16 = vmul.f32 -1.442695, %v982_v14 }
 0x11b   :  { %1697 = vpow2.f32 %v1583_v15 }
 0x11c   :  { %1699 = vpow2.f32 %v1584_v16 }
 0x121   :  { %v1698_v17 = vpop.eup %1697 }
 0x122   :  { %v1700_v19 = vpop.eup %1699  ;;  %v934_v20 = vadd.f32 1.0, %v1698_v17 }
 0x123   :  { %v987_v21 = vadd.f32 1.0, %v1700_v19 }
 0x124   :  { %1701 = vrcp.f32 %v934_v20  ;;  %v946_v30 = vand.u32 2147483648, %v934_v20  ;;  %v944_v33 = vand.u32 2147483647, %v934_v20  ;;  %vm940_vm5 = vweird.f32 %v934_v20 }
 0x125   :  { %1703 = vrcp.f32 %v987_v21  ;;  %v999_v31 = vand.u32 2147483648, %v987_v21  ;;  %v997_v36 = vand.u32 2147483647, %v987_v21  ;;  %vm993_vm6 = vweird.f32 %v987_v21 }
 0x126   :  { %1705 = vtanh.f32 %v929_v7  ;;  %v947_v41 = vor.u32 1.1754944e-38, %v946_v30  ;;  %vm945_vm9 = vcmp.eq.f32.partialorder %v944_v33, 8.507059e+37 }
 0x127   :  { %1707 = vtanh.f32 %v982_v14  ;;  %v1000_v43 = vor.u32 1.1754944e-38, %v999_v31  ;;  %vm998_vm10 = vcmp.eq.f32.partialorder %v997_v36, 8.507059e+37 }
 0x12a   :  { %v1702_v24 = vpop.eup %1701 }
 0x12b   :  { %v1704_v25 = vpop.eup %1703  ;;  %v936_v26 = vmul.f32 %v1702_v24, %v934_v20  ;;  %vm941_vm2 = vweird.f32 %v1702_v24 }
 0x12c   :  { %v989_v27 = vmul.f32 %v1704_v25, %v987_v21  ;;  %vm994_vm3 = vweird.f32 %v1704_v25  ;;  %vm942_vm7 = vmor %vm940_vm5, %vm941_vm2  ;;  %v1706_v42 = vpop.eup %1705  ;;  %vm1178_vm5 = vcmask 517376  }
 0x12d   :  { %v937_v28 = vsub.f32 1.0, %v936_v26  ;;  %vm995_vm8 = vmor %vm993_vm6, %vm994_vm3  ;;  %v1708_v45 = vpop.eup %1707  ;;  %vm1167_vm3 = vcmask 1041409  }
 0x12e   :  { %v990_v29 = vsub.f32 1.0, %v989_v27 }
 0x12f   :  { %v938_v32 = vmul.f32 %v1702_v24, %v937_v28 }
 0x130   :  { %v991_v35 = vmul.f32 %v1704_v25, %v990_v29 }
 0x131   :  { %v939_v38 = vadd.f32 %v1702_v24, %v938_v32 }
 0x132   :  { %v992_v40 = vadd.f32 %v1704_v25, %v991_v35 }
 0x133   :  { %v943_v44 = vsel %vm942_vm7, %v1702_v24, %v939_v38 }
 0x134   :  { %v996_v46 = vsel %vm995_vm8, %v1704_v25, %v992_v40  ;;  %v948_v47 = vsel %vm945_vm9, %v947_v41, %v943_v44 }
 0x135   :  { %v1001_v48 = vsel %vm998_vm10, %v1000_v43, %v996_v46  ;;  %v950_v49 = vsel %vm1984_vm4, %v1706_v42, %v948_v47 }
 0x136   :  { %v1003_v51 = vsel %vm1984_vm4, %v1708_v45, %v1001_v48  ;;  %953 = vrot.lane.b32.xlu2 %v950_v49, %s1907_s2 }
 0x137   :  { %1008 = vrot.lane.b32.xlu1 %v1003_v51, %s1908_s4  ;;  %1004 = vrot.lane.b32.xlu0 %v1003_v51, %s1909_s19 }
 0x13e   :  { %955 = vrot.lane.b32.xlu2 %v950_v49, %s1908_s4 }
 0x13f   :  { %1006 = vrot.lane.b32.xlu0 %v1003_v51, %s1907_s2  ;;  %951 = vrot.lane.b32.xlu1 %v950_v49, %s1909_s19 }
 0x190   :  { %v954_v54 = vpop.permute.xlu2 %953 }
 0x191   :  { %v958_v57 = vmul.f32 %v954_v54, %v950_v49 }
 0x198   :  { %v956_v3 = vpop.permute.xlu2 %955 }
 0x1a9   :  { %v1009_v52 = vpop.permute.xlu1 %1008  ;;  %v1005_v53 = vpop.permute.xlu0 %1004 }
 0x1aa   :  { %v1010_v58 = vmul.f32 0.0, %v1005_v53 }
 0x1b1   :  { %v1007_v55 = vpop.permute.xlu0 %1006  ;;  %v952_v56 = vpop.permute.xlu1 %951 }
 0x1b2   :  { %v1011_v59 = vmul.f32 %v1007_v55, %v1003_v51  ;;  %v957_v61 = vmul.f32 0.0, %v952_v56 }
 0x1b4   :  { %v1998_v62 = vadd.f32 %v1011_v59, %v1010_v58  ;;  %v2000_v0 = vadd.f32 %v958_v57, %v957_v61 }
 0x1b6   :  { %1709 = vtanh.f32 %v1998_v62 }
 0x1b7   :  { %1711 = vtanh.f32 %v2000_v0 }
 0x1bc   :  { %v1710_v1 = vpop.eup %1709 }
 0x1bd   :  { %v1712_v2 = vpop.eup %1711  ;;  %v1014_v60 = vmul.f32 %v1710_v1, %v1009_v52 }
 0x1be   :  { %v2004_v8 = vmul.f32 %v1712_v2, %v956_v3 }
 0x1bf   :  { %1089 = vmatmul.f32.vlgmr.msrb.gmra.mxu3 %v1014_v60 }
 0x1c0   :  { %1036 = vmatmul.f32.vlgmr.msrb.gmra.mxu2 %v2004_v8 }
 0x242   :  { %v1090_v34 = vpop.f32.mrf.mxu3 }
 0x243   :  { %v1037_v4 = vpop.f32.mrf.mxu2  ;;  %v1093_v18 = vadd.f32 %v1090_v34, %v1982_v63 }
 0x244   :  { %v1040_v39 = vadd.f32 %v1037_v4, %v1980_v50 }
 0x245   :  { %v1586_v5 = vmul.f32 -1.442695, %v1093_v18 }
 0x246   :  { %v1585_v6 = vmul.f32 -1.442695, %v1040_v39 }
 0x247   :  { %1713 = vpow2.f32 %v1586_v5 }
 0x248   :  { %1715 = vpow2.f32 %v1585_v6 }
 0x24d   :  { %v1714_v9 = vpop.eup %1713 }
 0x24e   :  { %v1716_v10 = vpop.eup %1715  ;;  %v1098_v11 = vadd.f32 1.0, %v1714_v9 }
 0x24f   :  { %v1045_v12 = vadd.f32 1.0, %v1716_v10 }
 0x250   :  { %1717 = vrcp.f32 %v1098_v11  ;;  %v1110_v17 = vand.u32 2147483648, %v1098_v11  ;;  %v1108_v50 = vand.u32 2147483647, %v1098_v11  ;;  %vm1104_vm12 = vweird.f32 %v1098_v11 }
 0x251   :  { %1719 = vrcp.f32 %v1045_v12  ;;  %v1057_v27 = vand.u32 2147483648, %v1045_v12  ;;  %vm1051_vm0 = vweird.f32 %v1045_v12  ;;  %v1055_v29 = vand.u32 2147483647, %v1045_v12 }
 0x252   :  { %1721 = vtanh.f32 %v1093_v18  ;;  %v1111_v22 = vor.u32 1.1754944e-38, %v1110_v17  ;;  %vm1109_vm14 = vcmp.eq.f32.partialorder %v1108_v50, 8.507059e+37 }
 0x253   :  { %1723 = vtanh.f32 %v1040_v39  ;;  %v1058_v31 = vor.u32 1.1754944e-38, %v1057_v27  ;;  %vm1056_vm2 = vcmp.eq.f32.partialorder %v1055_v29, 8.507059e+37 }
 0x254   :  { %1725 = vtanh.f32 %v1014_v60 }
 0x256   :  { %v1718_v13 = vpop.eup %1717 }
 0x257   :  { %v1720_v7 = vpop.eup %1719  ;;  %v1100_v14 = vmul.f32 %v1718_v13, %v1098_v11  ;;  %vm1105_vm11 = vweird.f32 %v1718_v13 }
 0x258   :  { %v1047_v15 = vmul.f32 %v1720_v7, %v1045_v12  ;;  %vm1106_vm13 = vmor %vm1104_vm12, %vm1105_vm11  ;;  %vm1052_vm15 = vweird.f32 %v1720_v7  ;;  %v1722_v25 = vpop.eup %1721 }
 0x259   :  { %v1101_v16 = vsub.f32 1.0, %v1100_v14  ;;  %vm1053_vm1 = vmor %vm1051_vm0, %vm1052_vm15  ;;  %v1724_v33 = vpop.eup %1723 }
 0x25a   :  { %v1048_v63 = vsub.f32 1.0, %v1047_v15  ;;  %v1726_v43 = vpop.eup %1725 }
 0x25b   :  { %v1102_v19 = vmul.f32 %v1718_v13, %v1101_v16  ;;  %v1157_v37 = vrot.slane %v1726_v43, 4 }
 0x25c   :  { %v1049_v20 = vmul.f32 %v1720_v7, %v1048_v63 }
 0x25d   :  { %v1103_v21 = vadd.f32 %v1718_v13, %v1102_v19  ;;  %v1158_v52 = vmax.f32 %v1726_v43, %v1157_v37 }
 0x25e   :  { %v1050_v24 = vadd.f32 %v1720_v7, %v1049_v20 }
 0x25f   :  { %v1107_v23 = vsel %vm1106_vm13, %v1718_v13, %v1103_v21  ;;  %v1159_v56 = vrot.slane %v1158_v52, 2 }
 0x260   :  { %v1112_v26 = vsel %vm1109_vm14, %v1111_v22, %v1107_v23  ;;  %v1054_v30 = vsel %vm1053_vm1, %v1720_v7, %v1050_v24 }
 0x261   :  { %v1114_v28 = vsel %vm1984_vm4, %v1722_v25, %v1112_v26  ;;  %v1059_v32 = vsel %vm1056_vm2, %v1058_v31, %v1054_v30 }
 0x262   :  { %1115 = vrot.lane.b32.xlu0 %v1114_v28, %s1909_s19  ;;  %1119 = vrot.lane.b32.xlu2 %v1114_v28, %s1908_s4  ;;  %v1061_v35 = vsel %vm1984_vm4, %v1724_v33, %v1059_v32  ;;  %vm1170_vm4 = vcmask 254976  }
 0x263   :  { %1117 = vrot.lane.b32.xlu1 %v1114_v28, %s1907_s2 }
 0x26a   :  { %1066 = vrot.lane.b32.xlu2 %v1061_v35, %s1908_s4  ;;  %1062 = vrot.lane.b32.xlu0 %v1061_v35, %s1909_s19 }
 0x26b   :  { %1064 = vrot.lane.b32.xlu1 %v1061_v35, %s1907_s2 }
 0x2bc   :  { %v1120_v47 = vpop.permute.xlu2 %1119 }
 0x2c4   :  { %v1067_v58 = vpop.permute.xlu2 %1066 }
 0x2d4   :  { %v1116_v36 = vpop.permute.xlu0 %1115 }
 0x2d5   :  { %v1121_v38 = vmul.f32 %v1116_v36, %v1998_v62  ;;  %v1118_v40 = vpop.permute.xlu1 %1117  ;;  %v1160_v62 = vmax.f32 %v1158_v52, %v1159_v56 }
 0x2d6   :  { %v1122_v41 = vmul.f32 %v1118_v40, %v1114_v28 }
 0x2d7   :  { %v1161_v60 = vrot.slane %v1160_v62, 1 }
 0x2d8   :  { %v1123_v42 = vadd.f32 %v1122_v41, %v1121_v38 }
 0x2d9   :  { %v1162_v39 = vmax.f32 %v1160_v62, %v1161_v60 }
 0x2da   :  { %1727 = vtanh.f32 %v1123_v42 }
 0x2db   :  { %1729 = vtanh.f32 %v2004_v8 }
 0x2dc   :  { %v1063_v44 = vpop.permute.xlu0 %1062 }
 0x2dd   :  { %v1068_v45 = vmul.f32 %v1063_v44, %v2000_v0  ;;  %v1065_v46 = vpop.permute.xlu1 %1064 }
 0x2de   :  { %v1069_v48 = vmul.f32 %v1065_v46, %v1061_v35 }
 0x2e0   :  { %v1728_v49 = vpop.eup %1727  ;;  %v1070_v51 = vadd.f32 %v1069_v48, %v1068_v45 }
 0x2e1   :  { %v1125_v53 = vmul.f32 %v1728_v49, %v1120_v47  ;;  %v1730_v54 = vpop.eup %1729 }
 0x2e2   :  { %1731 = vtanh.f32 %v1070_v51  ;;  %v1135_v55 = vrot.slane %v1730_v54, 4 }
 0x2e3   :  { %1733 = vtanh.f32 %v1125_v53 }
 0x2e4   :  { %v1136_v61 = vmax.f32 %v1730_v54, %v1135_v55 }
 0x2e6   :  { %v1137_v3 = vrot.slane %v1136_v61, 2 }
 0x2e8   :  { %v1732_v57 = vpop.eup %1731  ;;  %v1138_v18 = vmax.f32 %v1136_v61, %v1137_v3 }
 0x2e9   :  { %v1734_v59 = vpop.eup %1733  ;;  %v1072_v1 = vmul.f32 %v1732_v57, %v1067_v58 }
 0x2ea   :  { %v1151_v2 = vrot.slane %v1734_v59, 4  ;;  %v1139_v11 = vrot.slane %v1138_v18, 1 }
 0x2eb   :  { %1735 = vtanh.f32 %v1072_v1 }
 0x2ec   :  { %v1152_v0 = vmax.f32 %v1734_v59, %v1151_v2  ;;  %1737 = vtanh.f32 %v1162_v39  ;;  %v1140_v7 = vmax.f32 %v1138_v18, %v1139_v11 }
 0x2ee   :  { %v1153_v8 = vrot.slane %v1152_v0, 2 }
 0x2f0   :  { %v1154_v34 = vmax.f32 %v1152_v0, %v1153_v8 }
 0x2f1   :  { %v1736_v4 = vpop.eup %1735 }
 0x2f2   :  { %v1141_v5 = vrot.slane %v1736_v4, 4  ;;  %v1155_v6 = vrot.slane %v1154_v34, 1  ;;  %v1738_v15 = vpop.eup %1737 }
 0x2f4   :  { %v1142_v9 = vmax.f32 %v1736_v4, %v1141_v5  ;;  %v1156_v10 = vmax.f32 %v1154_v34, %v1155_v6 }
 0x2f6   :  { %v1143_v12 = vrot.slane %v1142_v9, 2  ;;  %1739 = vtanh.f32 %v1156_v10 }
 0x2f7   :  { %1741 = vtanh.f32 %v1140_v7 }
 0x2f8   :  { %v1144_v13 = vmax.f32 %v1142_v9, %v1143_v12 }
 0x2fa   :  { %v1145_v14 = vrot.slane %v1144_v13, 1 }
 0x2fc   :  { %v1740_v16 = vpop.eup %1739  ;;  %v1146_v17 = vmax.f32 %v1144_v13, %v1145_v14 }
 0x2fd   :  { %v1174_v63 = vsel %vm1167_vm3, %v1738_v15, %v1740_v16  ;;  %v1742_v19 = vpop.eup %1741 }
 0x2fe   :  { %1175 = vrot.lane.b32.xlu0 %v1174_v63, %s1908_s4  ;;  %1743 = vtanh.f32 %v1146_v17 }
 0x304   :  { %v1744_v50 = vpop.eup %1743 }
 0x305   :  { %v1168_v20 = vsel %vm1167_vm3, %v1744_v50, %v1742_v19 }
 0x306   :  { %1171 = vst.msk [vmem:[#allocation14] sm:$0x3] %vm1170_vm4, %v1168_v20 }
 0x370   :  { %v1176_v21 = vpop.permute.xlu0 %1175 }
 0x371   :  { %1179 = vst.msk [vmem:[#allocation14] sm:$0x3] %vm1178_vm5, %v1176_v21 }
 0x372   :  { %1190 = dma.vmem_to_hbm [thread:$0]  %s1186_s21, 32, %s1188_s24, [#allocation7]  }
 0x373   :  { %1895 = dma.done.wait [#allocation7], 32  }
 0x374   :  { %1896 = vsyncadd [#allocation7], 4294967264 }
 0x375   :  { %1195 = vsyncpa [#allocation6], 1 }
 0x376   :  { %1196 = vsyncpa [#allocation9], 1 }
 0x377   :  { %1197 = vsyncpa [#allocation12], 1 }
 0x378   :  { %1198 = vsyncpa [#allocation7], 1 }

</bundles_post_ra>
